<compile_context>
chip_gen: v7x
topology: tpu7x:2x2x1
jax: 0.10.0
libtpu: 0.0.40
codegen_flags: <defaults>
</compile_context>

<pallas_src>
import functools

import jax
import jax.numpy as jnp
import numpy as np
from jax.experimental import pallas as pl
from jax.experimental.pallas import tpu as pltpu

_FALLBACK_BLOCK_BUDGET = 2 << 20   # used when the chip cannot be identified


# ----------------------------------------------------------------------------
# Hardware introspection (best-effort, always falls back safely)
# ----------------------------------------------------------------------------
@functools.lru_cache(maxsize=1)
def _tpu_vmem_capacity():
    try:
        info = pltpu.get_tpu_info()
        return int(getattr(info, "vmem_capacity_bytes", 0) or 0)
    except Exception:
        return 0


@functools.lru_cache(maxsize=1)
def _block_byte_budget():
    """Per-block byte budget; ~4x this (in+out, double-buffered) lives in VMEM."""
    vmem = _tpu_vmem_capacity()
    if vmem <= 0:
        return _FALLBACK_BLOCK_BUDGET
    if vmem <= (80 << 20):     # v7x-class: 64 MiB VMEM, ~3.2 TB/s HBM -> big blocks
        return 4 << 20
    return 3 << 20             # v5e/v6e-class: 128 MiB VMEM


@functools.lru_cache(maxsize=1)
def _num_tensorcores():
    """Best-effort TensorCores-per-device count (v7x/megacore -> 2)."""
    try:
        info = pltpu.get_tpu_info()
        for name in ("num_cores", "core_count", "num_tensorcores",
                     "tensor_core_count", "num_cores_per_chip", "cores_per_chip"):
            v = getattr(info, name, None)
            if isinstance(v, (int, np.integer)) and int(v) >= 1:
                return int(v)
    except Exception:
        pass
    try:
        dev = jax.devices()[0]
        for name in ("num_cores", "core_count"):
            v = getattr(dev, name, None)
            if isinstance(v, (int, np.integer)) and int(v) >= 1:
                return int(v)
    except Exception:
        pass
    return 1


# ----------------------------------------------------------------------------
# Tiling helpers
# ----------------------------------------------------------------------------
def _sublane_unit(itemsize, extent):
    """Packed sublane unit: 8 for f32, 16 for bf16, 32 for int8/fp8."""
    unit = max(8, 32 // int(itemsize))
    if extent % unit != 0 and extent % 8 == 0:
        unit = 8   # still sublane-aligned; only packed-relayout cost remains
    return unit


def _band_tile(size, unit, mask_param):
    """Smallest multiple-of-unit divisor of size that is >= min(mask_param, size).

    Guarantees a mask band spans <= 2 tiles.  Falls back to the full extent when
    the axis is not unit-alignable (block dim == full array dim is always legal;
    note: a non-128-multiple time axis lowers to masked vst.msk partial stores —
    callers with odd T should pad upstream).
    """
    if size % unit != 0 or size <= unit:
        return size
    target = max(1, min(int(mask_param), size))
    for d in range(unit, size + 1, unit):
        if size % d == 0 and d >= target:
            return d
    return size


def _other_tile(size, unit, max_elems):
    """Largest multiple-of-unit divisor of size with extent <= max_elems."""
    if size % unit != 0 or size <= unit or size <= max_elems:
        return size
    best = unit
    for d in range(unit, size + 1, unit):
        if size % d == 0 and d <= max_elems:
            best = d
    return best


# ----------------------------------------------------------------------------
# Kernels
# ----------------------------------------------------------------------------
def _band_mask_kernel(start_ref, end_ref, x_ref, o_ref, *, mask_dim, mask_value,
                      band_tile, num_band_tiles, per_example):
    """Masked fill of one (nb, f_blk, t_blk) tile sitting at a data-dependent
    offset along the masked axis (chosen by the index_map from SMEM bounds)."""
    n = pl.program_id(0)                 # example (or example-block) index
    t = pl.program_id(2)                 # band-tile index within the mask window
    sidx = n if per_example else 0
    s = start_ref[sidx]                  # int32 scalars in SMEM
    e = end_ref[sidx]
    # Global offset of this block along the masked axis (must match index_map).
    base = jnp.clip(s // band_tile + t, 0, num_band_tiles - 1) * band_tile
    x = x_ref[...]
    idx = jax.lax.broadcasted_iota(jnp.int32, x.shape, mask_dim) + base
    mask = (idx >= s) & (idx < e)
    o_ref[...] = jnp.where(mask, jnp.asarray(mask_value, x.dtype), x)


def _stream_mask_kernel(start_ref, end_ref, x_ref, o_ref, *, mask_dim, mask_value, nb):
    """Full-axis streaming: nb examples per block, per-example bounds from SMEM."""
    n = pl.program_id(0)
    base = n * nb
    for i in range(nb):                  # static unroll, nb <= 16
        s = start_ref[base + i]
        e = end_ref[base + i]
        xi = x_ref[i]                    # (F, T)
        idx = jax.lax.broadcasted_iota(jnp.int32, xi.shape, mask_dim - 1)
        mask = (idx >= s) & (idx < e)
        o_ref[i] = jnp.where(mask, jnp.asarray(mask_value, xi.dtype), xi)


# ----------------------------------------------------------------------------
# pallas_call launcher with guarded aggressive->safe fallback
# ----------------------------------------------------------------------------
def _launch(kernel, grid, block, index_map, x3, start_i32, end_i32, *,
            base_sems, want_core_parallel, use_buffered, block_bytes):
    attempts = []
    if want_core_parallel:
        attempts.append(((pltpu.CORE_PARALLEL,) + tuple(base_sems[1:]), use_buffered))
    attempts.append((tuple(base_sems), use_buffered))
    if use_buffered:
        attempts.append((tuple(base_sems), False))
    uniq = []
    for a in attempts:
        if a not in uniq:
            uniq.append(a)

    cp_extra = {}
    est_vmem = 2 * block_bytes * (3 if use_buffered else 2)   # in+out x buffers
    if est_vmem > (14 << 20):
        # Stay under v7x's 64 MiB physical VMEM while lifting v5e's 16 MiB default.
        cp_extra["vmem_limit_bytes"] = int(min(32 << 20, est_vmem + (4 << 20)))

    last_err = None
    for sems, buffered in uniq:
        try:
            spec_kwargs = {"pipeline_mode": pl.Buffered(3)} if buffered else {}
            grid_spec = pltpu.PrefetchScalarGridSpec(
                num_scalar_prefetch=2,
                grid=grid,
                in_specs=[pl.BlockSpec(block, index_map, **spec_kwargs)],
                out_specs=pl.BlockSpec(block, index_map, **spec_kwargs),
            )
            call = pl.pallas_call(
                kernel,
                out_shape=jax.ShapeDtypeStruct(x3.shape, x3.dtype),
                grid_spec=grid_spec,
                # Output aliases x3: tiles the grid never visits keep the input
                # data.  Donate the spectrogram buffer (jax.jit donate_argnums)
                # to avoid the defensive full-array HBM copy XLA otherwise adds.
                input_output_aliases={2: 0},
                compiler_params=pltpu.CompilerParams(
                    dimension_semantics=sems, **cp_extra),
            )
            return call(start_i32, end_i32, x3)
        except Exception as err:   # CORE_PARALLEL / Buffered(3) unsupported here
            last_err = err
    raise last_err


# ----------------------------------------------------------------------------
# Driver: pick streaming vs band-only tiling, build specs
# ----------------------------------------------------------------------------
def _pallas_axis_mask(x3, start_i32, end_i32, mask_value, *, mask_dim, mask_param,
                      per_example):
    """x3: (N, F, T); start/end: int32 bounds, shape (N,) if per_example else (1,)."""
    N, F, T = x3.shape
    itemsize = np.dtype(x3.dtype).itemsize
    budget = _block_byte_budget()
    mask_value = float(mask_value)
    ncores = _num_tensorcores()

    # ---- batched full-axis streaming for tiny per-example slabs (iid mel case) ----
    full_example_bytes = F * T * itemsize
    if per_example and full_example_bytes <= budget // 4:
        nb = 1
        for d in range(1, min(N, 16) + 1):              # cap unroll at 16
            if N % d == 0 and d * full_example_bytes <= budget:
                nb = d
        grid = (N // nb,)
        block = (nb, F, T)
        kernel = functools.partial(_stream_mask_kernel, mask_dim=mask_dim,
                                   mask_value=mask_value, nb=nb)
        index_map = lambda n, s_ref, e_ref: (n, 0, 0)
        return _launch(kernel, grid, block, index_map, x3, start_i32, end_i32,
                       base_sems=(pltpu.PARALLEL,),
                       want_core_parallel=(ncores >= 2 and grid[0] >= 2),
                       use_buffered=False,
                       block_bytes=nb * full_example_bytes)

    # ---- band-only tiling: only tiles overlapping the mask band are DMA'd ----
    band_size = x3.shape[mask_dim]
    other_dim = 2 if mask_dim == 1 else 1
    other_size = x3.shape[other_dim]
    sub_unit = _sublane_unit(itemsize, F)               # dtype-aware sublane unit
    band_unit = sub_unit if mask_dim == 1 else 128
    other_unit = 128 if mask_dim == 1 else sub_unit

    band_tile = _band_tile(band_size, band_unit, mask_param)
    num_band_tiles = band_size // band_tile
    max_other = max(other_unit, budget // max(1, band_tile * itemsize))
    other_tile = _other_tile(other_size, other_unit, max_other)
    n_other = other_size // other_tile
    n_band = 1 if num_band_tiles == 1 else 2            # band_tile >= mask width

    per_ex_bytes = band_tile * other_tile * itemsize
    if per_example:
        nb = 1                                          # bounds differ per example
    else:
        nb = 1                                          # shared bounds: batch examples
        for d in range(1, N + 1):
            if N % d == 0 and d * per_ex_bytes <= budget:
                nb = d
    n_grid = N // nb
    block_bytes = nb * per_ex_bytes

    if mask_dim == 1:   # frequency masking: band-tile the sublane axis
        block = (nb, band_tile, other_tile)

        def index_map(n, o, t, s_ref, e_ref):
            s = s_ref[n] if per_example else s_ref[0]
            return (n, jnp.clip(s // band_tile + t, 0, num_band_tiles - 1), o)
    else:               # time masking: band-tile the lane axis (lane-dense tiles)
        block = (nb, other_tile, band_tile)

        def index_map(n, o, t, s_ref, e_ref):
            s = s_ref[n] if per_example else s_ref[0]
            return (n, o, jnp.clip(s // band_tile + t, 0, num_band_tiles - 1))

    kernel = functools.partial(
        _band_mask_kernel, mask_dim=mask_dim, mask_value=mask_value,
        band_tile=band_tile, num_band_tiles=num_band_tiles, per_example=per_example)

    grid = (n_grid, n_other, n_band)
    return _launch(kernel, grid, block, index_map, x3, start_i32, end_i32,
                   # Band axis MUST stay arbitrary (index_map clip can revisit
                   # the same output block on consecutive band steps).
                   base_sems=(pltpu.PARALLEL, pltpu.PARALLEL, pltpu.ARBITRARY),
                   want_core_parallel=(ncores >= 2 and n_grid >= 2),
                   use_buffered=(block_bytes <= (512 << 10)),
                   block_bytes=block_bytes)


# ----------------------------------------------------------------------------
# Glue: random mask-interval generation (mirrors torch.rand usage) + reshape.
# Bounds are always drawn/computed in float32 (avoids bf16 edge shifts).
# ----------------------------------------------------------------------------
def _iid_bounds(key, specgrams, mask_param, axis):
    """Per-(batch, channel) float mask bounds — mirrors mask_along_axis_iid."""
    k1, k2 = jax.random.split(key)
    lead = specgrams.shape[:2]
    size = specgrams.shape[axis]
    value = jax.random.uniform(k1, lead, dtype=jnp.float32) * mask_param
    min_value = jax.random.uniform(k2, lead, dtype=jnp.float32) * (size - value)
    return min_value, min_value + value           # float start, float end


def _single_bounds(key, size, mask_param):
    """Single shared mask interval — mirrors mask_along_axis (.long() flooring)."""
    k1, k2 = jax.random.split(key)
    value = jax.random.uniform(k1, (), dtype=jnp.float32) * mask_param
    min_value = jax.random.uniform(k2, (), dtype=jnp.float32) * (size - value)
    start = jnp.floor(min_value)                  # torch: min_value.long()
    end = start + jnp.floor(value)                # torch: min.long() + value.long()
    return start, end


def _to_int_bounds(start_f, end_f, size):
    # For integer i >= 0: (i >= s) & (i < e) with float s,e  <=>  ceil(s) <= i < ceil(e).
    s = jnp.clip(jnp.ceil(start_f), 0, size).astype(jnp.int32)
    e = jnp.clip(jnp.ceil(end_f), 0, size).astype(jnp.int32)
    return s, e


def mask_along_axis_iid(key, specgrams, mask_param, mask_value, axis):
    """iid masking over (B, C, F, T).  For in-place HBM behaviour, call under
    jax.jit with donate_argnums on `specgrams`."""
    if axis not in (2, 3):
        raise ValueError("Only Frequency and Time masking are supported")
    B, C, F, T = specgrams.shape
    size = specgrams.shape[axis]
    start_f, end_f = _iid_bounds(key, specgrams, mask_param, axis)
    s_i, e_i = _to_int_bounds(start_f.reshape(-1), end_f.reshape(-1), size)
    x3 = specgrams.reshape(B * C, F, T)
    out = _pallas_axis_mask(x3, s_i, e_i, mask_value,
                            mask_dim=axis - 1, mask_param=mask_param,
                            per_example=True)
    return out.reshape(B, C, F, T)


def mask_along_axis(key, specgram, mask_param, mask_value, axis):
    """Shared-mask masking over (..., F, T).  For in-place HBM behaviour, call
    under jax.jit with donate_argnums on `specgram`."""
    if axis not in (1, 2):
        raise ValueError("Only Frequency and Time masking are supported")
    shape = specgram.shape
    F, T = shape[-2], shape[-1]
    x3 = specgram.reshape((-1, F, T))
    size = x3.shape[axis]
    start_f, end_f = _single_bounds(key, size, mask_param)
    s_i, e_i = _to_int_bounds(start_f.reshape(1), end_f.reshape(1), size)
    out = _pallas_axis_mask(x3, s_i, e_i, mask_value,
                            mask_dim=axis, mask_param=mask_param,
                            per_example=False)
    return out.reshape(shape[:-2] + (F, T))


class AxisMasking:
    """Pallas-TPU port of torchaudio's _AxisMasking.

    axis=1: frequency masking (second-to-last dim); axis=2: time masking (last dim).
    RNG state is an explicit JAX PRNG key instead of torch's global generator.
    For a truly in-place op, jit the caller with donate_argnums on the spectrogram
    (the kernel aliases output to input; without donation XLA inserts a copy).
    """

    def __init__(self, mask_param: int, axis: int, iid_masks: bool) -> None:
        self.mask_param = mask_param
        self.axis = axis
        self.iid_masks = iid_masks

    def __call__(self, key, specgram, mask_value: float = 0.0):
        if self.iid_masks and specgram.ndim == 4:
            return mask_along_axis_iid(
                key, specgram, self.mask_param, mask_value, self.axis + 1)
        return mask_along_axis(key, specgram, self.mask_param, mask_value, self.axis)


# ----------------------------------------------------------------------------
# Pure-JAX reference (float-boundary semantics, identical to the torch code).
# ----------------------------------------------------------------------------
def _reference(x3, start_f, end_f, mask_value, mask_dim):
    idx = jax.lax.broadcasted_iota(jnp.float32, x3.shape, mask_dim)
    s = jnp.reshape(jnp.asarray(start_f, jnp.float32), (-1, 1, 1))
    e = jnp.reshape(jnp.asarray(end_f, jnp.float32), (-1, 1, 1))
    mask = (idx >= s) & (idx < e)
    return jnp.where(mask, jnp.asarray(mask_value, x3.dtype), x3)


if __name__ == "__main__":
    root = jax.random.PRNGKey(0)
    (kx1, kt1, kf1, kx2, kt2, kx3, kf3, kx4, kt4, kf4) = jax.random.split(root, 10)

    # ---- case 1: (2,4,64,512) f32 — iid time masking -> batched streaming path;
    #      shared freq masking -> shared band path (untouched tiles via aliasing) ----
    B, C, F, T = 2, 4, 64, 512
    x1 = jax.random.normal(kx1, (B, C, F, T), dtype=jnp.float32)
    s_t, e_t = _iid_bounds(kt1, x1, 50, 3)
    ref_t1 = _reference(x1.reshape(-1, F, T), s_t.reshape(-1), e_t.reshape(-1),
                        0.0, 2).reshape(x1.shape)
    s_f, e_f = _single_bounds(kf1, F, 12)
    ref_f1 = _reference(x1.reshape(-1, F, T), s_f, e_f, -1.0, 1).reshape(x1.shape)
    ref_t1, ref_f1 = map(np.asarray, jax.block_until_ready((ref_t1, ref_f1)))

    y_t1 = AxisMasking(50, axis=2, iid_masks=True)(kt1, x1, 0.0)
    y_f1 = AxisMasking(12, axis=1, iid_masks=False)(kf1, x1, -1.0)
    jax.block_until_ready((y_t1, y_f1))
    np.testing.assert_array_equal(np.asarray(y_t1), ref_t1)
    np.testing.assert_array_equal(np.asarray(y_f1), ref_f1)

    # ---- case 2: (1,2,16,32768) f32 — iid time masking, per-example band path
    #      (band tiles + Buffered(3); most tiles untouched -> aliasing test) ----
    x2 = jax.random.normal(kx2, (1, 2, 16, 32768), dtype=jnp.float32)
    s_t2, e_t2 = _iid_bounds(kt2, x2, 300, 3)
    ref_t2 = _reference(x2.reshape(-1, 16, 32768), s_t2.reshape(-1), e_t2.reshape(-1),
                        0.0, 2).reshape(x2.shape)
    ref_t2 = np.asarray(jax.block_until_ready(ref_t2))
    y_t2 = AxisMasking(300, axis=2, iid_masks=True)(kt2, x2, 0.0)
    jax.block_until_ready(y_t2)
    np.testing.assert_array_equal(np.asarray(y_t2), ref_t2)

    # ---- case 3: (2,2,64,256) bf16 — shared freq masking, dtype-aware sublane unit ----
    x3 = jax.random.normal(kx3, (2, 2, 64, 256), dtype=jnp.bfloat16)
    s_f3, e_f3 = _single_bounds(kf3, 64, 20)
    ref_f3 = _reference(x3.reshape(-1, 64, 256), s_f3, e_f3, 0.5, 1).reshape(x3.shape)
    ref_f3 = np.asarray(jax.block_until_ready(ref_f3.astype(jnp.float32)))
    y_f3 = AxisMasking(20, axis=1, iid_masks=False)(kf3, x3, 0.5)
    jax.block_until_ready(y_f3)
    np.testing.assert_array_equal(np.asarray(y_f3.astype(jnp.float32)), ref_f3)

    # ---- case 4: tiny non-128-tileable shapes (fallback full-axis blocks) ----
    x4 = jax.random.normal(kx4, (2, 4, 16, 16), dtype=jnp.float32)
    s_t4, e_t4 = _iid_bounds(kt4, x4, 8, 3)
    ref_t4 = _reference(x4.reshape(-1, 16, 16), s_t4.reshape(-1), e_t4.reshape(-1),
                        0.0, 2).reshape(x4.shape)
    s_f4, e_f4 = _single_bounds(kf4, 16, 8)
    ref_f4 = _reference(x4.reshape(-1, 16, 16), s_f4, e_f4, 0.25, 1).reshape(x4.shape)
    ref_t4, ref_f4 = map(np.asarray, jax.block_until_ready((ref_t4, ref_f4)))
    y_t4 = AxisMasking(8, 2, True)(kt4, x4, 0.0)
    y_f4 = AxisMasking(8, 1, False)(kf4, x4, 0.25)
    jax.block_until_ready((y_t4, y_f4))
    np.testing.assert_array_equal(np.asarray(y_t4), ref_t4)
    np.testing.assert_array_equal(np.asarray(y_f4), ref_f4)

    print("KERNEL_OK")
</pallas_src>

<mosaic_0001>
module attributes {stable_mosaic.version = 11 : i64} {
  func.func @_stream_mask_kernel(%arg0: i32, %arg1: memref<8xi32, #tpu.memory_space<smem>>, %arg2: memref<8xi32, #tpu.memory_space<smem>>, %arg3: memref<8x64x512xf32, #tpu.memory_space<vmem>>, %arg4: memref<8x64x512xf32, #tpu.memory_space<vmem>>) attributes {dimension_semantics = [#tpu.dimension_semantics<parallel>], iteration_bounds = array<i64: 1>, scalar_prefetch = 2 : i64, scratch_operands = 0 : i64, tpu.core_type = #tpu.core_type<tc>, window_params = [{transform_indices = @transform_0, window_bounds = array<i64: 8, 64, 512>}, {transform_indices = @transform_1, window_bounds = array<i64: 8, 64, 512>}]} {
    %c8_i32 = arith.constant 8 : i32
    %0 = arith.muli %arg0, %c8_i32 : i32
    %c0_i32 = arith.constant 0 : i32
    %1 = arith.addi %0, %c0_i32 : i32
    %2 = arith.index_cast %1 : i32 to index
    %3 = memref.load %arg1[%2] : memref<8xi32, #tpu.memory_space<smem>>
    %c0_i32_0 = arith.constant 0 : i32
    %4 = arith.addi %0, %c0_i32_0 : i32
    %5 = arith.index_cast %4 : i32 to index
    %6 = memref.load %arg2[%5] : memref<8xi32, #tpu.memory_space<smem>>
    %c0 = arith.constant 0 : index
    %c0_1 = arith.constant 0 : index
    %c0_2 = arith.constant 0 : index
    %7 = vector.load %arg3[%c0, %c0_1, %c0_2] : memref<8x64x512xf32, #tpu.memory_space<vmem>>, vector<1x64x512xf32>
    %8 = vector.shape_cast %7 : vector<1x64x512xf32> to vector<64x512xf32>
    %9 = tpu.iota {dimensions = array<i32: 1>} : vector<64x512xi32>
    %10 = vector.broadcast %3 : i32 to vector<64x512xi32>
    %11 = arith.cmpi sge, %9, %10 : vector<64x512xi32>
    %12 = vector.broadcast %6 : i32 to vector<64x512xi32>
    %13 = arith.cmpi slt, %9, %12 : vector<64x512xi32>
    %14 = arith.andi %11, %13 : vector<64x512xi1>
    %cst = arith.constant 0.000000e+00 : f32
    %15 = vector.broadcast %cst : f32 to vector<64x512xf32>
    %16 = arith.select %14, %15, %8 : vector<64x512xi1>, vector<64x512xf32>
    %c0_3 = arith.constant 0 : index
    %c0_4 = arith.constant 0 : index
    %c0_5 = arith.constant 0 : index
    %17 = vector.load %arg4[%c0_3, %c0_4, %c0_5] : memref<8x64x512xf32, #tpu.memory_space<vmem>>, vector<1x64x512xf32>
    %18 = vector.shape_cast %17 : vector<1x64x512xf32> to vector<64x512xf32>
    %19 = vector.shape_cast %16 : vector<64x512xf32> to vector<1x64x512xf32>
    tpu.vector_store %arg4[%c0_3, %c0_4, %c0_5], %19 {strides = array<i32>} : memref<8x64x512xf32, #tpu.memory_space<vmem>>, vector<1x64x512xf32>,
    %c1_i32 = arith.constant 1 : i32
    %20 = arith.addi %0, %c1_i32 : i32
    %21 = arith.index_cast %20 : i32 to index
    %22 = memref.load %arg1[%21] : memref<8xi32, #tpu.memory_space<smem>>
    %c1_i32_6 = arith.constant 1 : i32
    %23 = arith.addi %0, %c1_i32_6 : i32
    %24 = arith.index_cast %23 : i32 to index
    %25 = memref.load %arg2[%24] : memref<8xi32, #tpu.memory_space<smem>>
    %c1 = arith.constant 1 : index
    %c0_7 = arith.constant 0 : index
    %c0_8 = arith.constant 0 : index
    %26 = vector.load %arg3[%c1, %c0_7, %c0_8] : memref<8x64x512xf32, #tpu.memory_space<vmem>>, vector<1x64x512xf32>
    %27 = vector.shape_cast %26 : vector<1x64x512xf32> to vector<64x512xf32>
    %28 = tpu.iota {dimensions = array<i32: 1>} : vector<64x512xi32>
    %29 = vector.broadcast %22 : i32 to vector<64x512xi32>
    %30 = arith.cmpi sge, %28, %29 : vector<64x512xi32>
    %31 = vector.broadcast %25 : i32 to vector<64x512xi32>
    %32 = arith.cmpi slt, %28, %31 : vector<64x512xi32>
    %33 = arith.andi %30, %32 : vector<64x512xi1>
    %cst_9 = arith.constant 0.000000e+00 : f32
    %34 = vector.broadcast %cst_9 : f32 to vector<64x512xf32>
    %35 = arith.select %33, %34, %27 : vector<64x512xi1>, vector<64x512xf32>
    %c1_10 = arith.constant 1 : index
    %c0_11 = arith.constant 0 : index
    %c0_12 = arith.constant 0 : index
    %36 = vector.load %arg4[%c1_10, %c0_11, %c0_12] : memref<8x64x512xf32, #tpu.memory_space<vmem>>, vector<1x64x512xf32>
    %37 = vector.shape_cast %36 : vector<1x64x512xf32> to vector<64x512xf32>
    %38 = vector.shape_cast %35 : vector<64x512xf32> to vector<1x64x512xf32>
    tpu.vector_store %arg4[%c1_10, %c0_11, %c0_12], %38 {strides = array<i32>} : memref<8x64x512xf32, #tpu.memory_space<vmem>>, vector<1x64x512xf32>,
    %c2_i32 = arith.constant 2 : i32
    %39 = arith.addi %0, %c2_i32 : i32
    %40 = arith.index_cast %39 : i32 to index
    %41 = memref.load %arg1[%40] : memref<8xi32, #tpu.memory_space<smem>>
    %c2_i32_13 = arith.constant 2 : i32
    %42 = arith.addi %0, %c2_i32_13 : i32
    %43 = arith.index_cast %42 : i32 to index
    %44 = memref.load %arg2[%43] : memref<8xi32, #tpu.memory_space<smem>>
    %c2 = arith.constant 2 : index
    %c0_14 = arith.constant 0 : index
    %c0_15 = arith.constant 0 : index
    %45 = vector.load %arg3[%c2, %c0_14, %c0_15] : memref<8x64x512xf32, #tpu.memory_space<vmem>>, vector<1x64x512xf32>
    %46 = vector.shape_cast %45 : vector<1x64x512xf32> to vector<64x512xf32>
    %47 = tpu.iota {dimensions = array<i32: 1>} : vector<64x512xi32>
    %48 = vector.broadcast %41 : i32 to vector<64x512xi32>
    %49 = arith.cmpi sge, %47, %48 : vector<64x512xi32>
    %50 = vector.broadcast %44 : i32 to vector<64x512xi32>
    %51 = arith.cmpi slt, %47, %50 : vector<64x512xi32>
    %52 = arith.andi %49, %51 : vector<64x512xi1>
    %cst_16 = arith.constant 0.000000e+00 : f32
    %53 = vector.broadcast %cst_16 : f32 to vector<64x512xf32>
    %54 = arith.select %52, %53, %46 : vector<64x512xi1>, vector<64x512xf32>
    %c2_17 = arith.constant 2 : index
    %c0_18 = arith.constant 0 : index
    %c0_19 = arith.constant 0 : index
    %55 = vector.load %arg4[%c2_17, %c0_18, %c0_19] : memref<8x64x512xf32, #tpu.memory_space<vmem>>, vector<1x64x512xf32>
    %56 = vector.shape_cast %55 : vector<1x64x512xf32> to vector<64x512xf32>
    %57 = vector.shape_cast %54 : vector<64x512xf32> to vector<1x64x512xf32>
    tpu.vector_store %arg4[%c2_17, %c0_18, %c0_19], %57 {strides = array<i32>} : memref<8x64x512xf32, #tpu.memory_space<vmem>>, vector<1x64x512xf32>,
    %c3_i32 = arith.constant 3 : i32
    %58 = arith.addi %0, %c3_i32 : i32
    %59 = arith.index_cast %58 : i32 to index
    %60 = memref.load %arg1[%59] : memref<8xi32, #tpu.memory_space<smem>>
    %c3_i32_20 = arith.constant 3 : i32
    %61 = arith.addi %0, %c3_i32_20 : i32
    %62 = arith.index_cast %61 : i32 to index
    %63 = memref.load %arg2[%62] : memref<8xi32, #tpu.memory_space<smem>>
    %c3 = arith.constant 3 : index
    %c0_21 = arith.constant 0 : index
    %c0_22 = arith.constant 0 : index
    %64 = vector.load %arg3[%c3, %c0_21, %c0_22] : memref<8x64x512xf32, #tpu.memory_space<vmem>>, vector<1x64x512xf32>
    %65 = vector.shape_cast %64 : vector<1x64x512xf32> to vector<64x512xf32>
    %66 = tpu.iota {dimensions = array<i32: 1>} : vector<64x512xi32>
    %67 = vector.broadcast %60 : i32 to vector<64x512xi32>
    %68 = arith.cmpi sge, %66, %67 : vector<64x512xi32>
    %69 = vector.broadcast %63 : i32 to vector<64x512xi32>
    %70 = arith.cmpi slt, %66, %69 : vector<64x512xi32>
    %71 = arith.andi %68, %70 : vector<64x512xi1>
    %cst_23 = arith.constant 0.000000e+00 : f32
    %72 = vector.broadcast %cst_23 : f32 to vector<64x512xf32>
    %73 = arith.select %71, %72, %65 : vector<64x512xi1>, vector<64x512xf32>
    %c3_24 = arith.constant 3 : index
    %c0_25 = arith.constant 0 : index
    %c0_26 = arith.constant 0 : index
    %74 = vector.load %arg4[%c3_24, %c0_25, %c0_26] : memref<8x64x512xf32, #tpu.memory_space<vmem>>, vector<1x64x512xf32>
    %75 = vector.shape_cast %74 : vector<1x64x512xf32> to vector<64x512xf32>
    %76 = vector.shape_cast %73 : vector<64x512xf32> to vector<1x64x512xf32>
    tpu.vector_store %arg4[%c3_24, %c0_25, %c0_26], %76 {strides = array<i32>} : memref<8x64x512xf32, #tpu.memory_space<vmem>>, vector<1x64x512xf32>,
    %c4_i32 = arith.constant 4 : i32
    %77 = arith.addi %0, %c4_i32 : i32
    %78 = arith.index_cast %77 : i32 to index
    %79 = memref.load %arg1[%78] : memref<8xi32, #tpu.memory_space<smem>>
    %c4_i32_27 = arith.constant 4 : i32
    %80 = arith.addi %0, %c4_i32_27 : i32
    %81 = arith.index_cast %80 : i32 to index
    %82 = memref.load %arg2[%81] : memref<8xi32, #tpu.memory_space<smem>>
    %c4 = arith.constant 4 : index
    %c0_28 = arith.constant 0 : index
    %c0_29 = arith.constant 0 : index
    %83 = vector.load %arg3[%c4, %c0_28, %c0_29] : memref<8x64x512xf32, #tpu.memory_space<vmem>>, vector<1x64x512xf32>
    %84 = vector.shape_cast %83 : vector<1x64x512xf32> to vector<64x512xf32>
    %85 = tpu.iota {dimensions = array<i32: 1>} : vector<64x512xi32>
    %86 = vector.broadcast %79 : i32 to vector<64x512xi32>
    %87 = arith.cmpi sge, %85, %86 : vector<64x512xi32>
    %88 = vector.broadcast %82 : i32 to vector<64x512xi32>
    %89 = arith.cmpi slt, %85, %88 : vector<64x512xi32>
    %90 = arith.andi %87, %89 : vector<64x512xi1>
    %cst_30 = arith.constant 0.000000e+00 : f32
    %91 = vector.broadcast %cst_30 : f32 to vector<64x512xf32>
    %92 = arith.select %90, %91, %84 : vector<64x512xi1>, vector<64x512xf32>
    %c4_31 = arith.constant 4 : index
    %c0_32 = arith.constant 0 : index
    %c0_33 = arith.constant 0 : index
    %93 = vector.load %arg4[%c4_31, %c0_32, %c0_33] : memref<8x64x512xf32, #tpu.memory_space<vmem>>, vector<1x64x512xf32>
    %94 = vector.shape_cast %93 : vector<1x64x512xf32> to vector<64x512xf32>
    %95 = vector.shape_cast %92 : vector<64x512xf32> to vector<1x64x512xf32>
    tpu.vector_store %arg4[%c4_31, %c0_32, %c0_33], %95 {strides = array<i32>} : memref<8x64x512xf32, #tpu.memory_space<vmem>>, vector<1x64x512xf32>,
    %c5_i32 = arith.constant 5 : i32
    %96 = arith.addi %0, %c5_i32 : i32
    %97 = arith.index_cast %96 : i32 to index
    %98 = memref.load %arg1[%97] : memref<8xi32, #tpu.memory_space<smem>>
    %c5_i32_34 = arith.constant 5 : i32
    %99 = arith.addi %0, %c5_i32_34 : i32
    %100 = arith.index_cast %99 : i32 to index
    %101 = memref.load %arg2[%100] : memref<8xi32, #tpu.memory_space<smem>>
    %c5 = arith.constant 5 : index
    %c0_35 = arith.constant 0 : index
    %c0_36 = arith.constant 0 : index
    %102 = vector.load %arg3[%c5, %c0_35, %c0_36] : memref<8x64x512xf32, #tpu.memory_space<vmem>>, vector<1x64x512xf32>
    %103 = vector.shape_cast %102 : vector<1x64x512xf32> to vector<64x512xf32>
    %104 = tpu.iota {dimensions = array<i32: 1>} : vector<64x512xi32>
    %105 = vector.broadcast %98 : i32 to vector<64x512xi32>
    %106 = arith.cmpi sge, %104, %105 : vector<64x512xi32>
    %107 = vector.broadcast %101 : i32 to vector<64x512xi32>
    %108 = arith.cmpi slt, %104, %107 : vector<64x512xi32>
    %109 = arith.andi %106, %108 : vector<64x512xi1>
    %cst_37 = arith.constant 0.000000e+00 : f32
    %110 = vector.broadcast %cst_37 : f32 to vector<64x512xf32>
    %111 = arith.select %109, %110, %103 : vector<64x512xi1>, vector<64x512xf32>
    %c5_38 = arith.constant 5 : index
    %c0_39 = arith.constant 0 : index
    %c0_40 = arith.constant 0 : index
    %112 = vector.load %arg4[%c5_38, %c0_39, %c0_40] : memref<8x64x512xf32, #tpu.memory_space<vmem>>, vector<1x64x512xf32>
    %113 = vector.shape_cast %112 : vector<1x64x512xf32> to vector<64x512xf32>
    %114 = vector.shape_cast %111 : vector<64x512xf32> to vector<1x64x512xf32>
    tpu.vector_store %arg4[%c5_38, %c0_39, %c0_40], %114 {strides = array<i32>} : memref<8x64x512xf32, #tpu.memory_space<vmem>>, vector<1x64x512xf32>,
    %c6_i32 = arith.constant 6 : i32
    %115 = arith.addi %0, %c6_i32 : i32
    %116 = arith.index_cast %115 : i32 to index
    %117 = memref.load %arg1[%116] : memref<8xi32, #tpu.memory_space<smem>>
    %c6_i32_41 = arith.constant 6 : i32
    %118 = arith.addi %0, %c6_i32_41 : i32
    %119 = arith.index_cast %118 : i32 to index
    %120 = memref.load %arg2[%119] : memref<8xi32, #tpu.memory_space<smem>>
    %c6 = arith.constant 6 : index
    %c0_42 = arith.constant 0 : index
    %c0_43 = arith.constant 0 : index
    %121 = vector.load %arg3[%c6, %c0_42, %c0_43] : memref<8x64x512xf32, #tpu.memory_space<vmem>>, vector<1x64x512xf32>
    %122 = vector.shape_cast %121 : vector<1x64x512xf32> to vector<64x512xf32>
    %123 = tpu.iota {dimensions = array<i32: 1>} : vector<64x512xi32>
    %124 = vector.broadcast %117 : i32 to vector<64x512xi32>
    %125 = arith.cmpi sge, %123, %124 : vector<64x512xi32>
    %126 = vector.broadcast %120 : i32 to vector<64x512xi32>
    %127 = arith.cmpi slt, %123, %126 : vector<64x512xi32>
    %128 = arith.andi %125, %127 : vector<64x512xi1>
    %cst_44 = arith.constant 0.000000e+00 : f32
    %129 = vector.broadcast %cst_44 : f32 to vector<64x512xf32>
    %130 = arith.select %128, %129, %122 : vector<64x512xi1>, vector<64x512xf32>
    %c6_45 = arith.constant 6 : index
    %c0_46 = arith.constant 0 : index
    %c0_47 = arith.constant 0 : index
    %131 = vector.load %arg4[%c6_45, %c0_46, %c0_47] : memref<8x64x512xf32, #tpu.memory_space<vmem>>, vector<1x64x512xf32>
    %132 = vector.shape_cast %131 : vector<1x64x512xf32> to vector<64x512xf32>
    %133 = vector.shape_cast %130 : vector<64x512xf32> to vector<1x64x512xf32>
    tpu.vector_store %arg4[%c6_45, %c0_46, %c0_47], %133 {strides = array<i32>} : memref<8x64x512xf32, #tpu.memory_space<vmem>>, vector<1x64x512xf32>,
    %c7_i32 = arith.constant 7 : i32
    %134 = arith.addi %0, %c7_i32 : i32
    %135 = arith.index_cast %134 : i32 to index
    %136 = memref.load %arg1[%135] : memref<8xi32, #tpu.memory_space<smem>>
    %c7_i32_48 = arith.constant 7 : i32
    %137 = arith.addi %0, %c7_i32_48 : i32
    %138 = arith.index_cast %137 : i32 to index
    %139 = memref.load %arg2[%138] : memref<8xi32, #tpu.memory_space<smem>>
    %c7 = arith.constant 7 : index
    %c0_49 = arith.constant 0 : index
    %c0_50 = arith.constant 0 : index
    %140 = vector.load %arg3[%c7, %c0_49, %c0_50] : memref<8x64x512xf32, #tpu.memory_space<vmem>>, vector<1x64x512xf32>
    %141 = vector.shape_cast %140 : vector<1x64x512xf32> to vector<64x512xf32>
    %142 = tpu.iota {dimensions = array<i32: 1>} : vector<64x512xi32>
    %143 = vector.broadcast %136 : i32 to vector<64x512xi32>
    %144 = arith.cmpi sge, %142, %143 : vector<64x512xi32>
    %145 = vector.broadcast %139 : i32 to vector<64x512xi32>
    %146 = arith.cmpi slt, %142, %145 : vector<64x512xi32>
    %147 = arith.andi %144, %146 : vector<64x512xi1>
    %cst_51 = arith.constant 0.000000e+00 : f32
    %148 = vector.broadcast %cst_51 : f32 to vector<64x512xf32>
    %149 = arith.select %147, %148, %141 : vector<64x512xi1>, vector<64x512xf32>
    %c7_52 = arith.constant 7 : index
    %c0_53 = arith.constant 0 : index
    %c0_54 = arith.constant 0 : index
    %150 = vector.load %arg4[%c7_52, %c0_53, %c0_54] : memref<8x64x512xf32, #tpu.memory_space<vmem>>, vector<1x64x512xf32>
    %151 = vector.shape_cast %150 : vector<1x64x512xf32> to vector<64x512xf32>
    %152 = vector.shape_cast %149 : vector<64x512xf32> to vector<1x64x512xf32>
    tpu.vector_store %arg4[%c7_52, %c0_53, %c0_54], %152 {strides = array<i32>} : memref<8x64x512xf32, #tpu.memory_space<vmem>>, vector<1x64x512xf32>,
    return
  }
  func.func @transform_0(%arg0: i32, %arg1: memref<8xi32, #tpu.memory_space<smem>>, %arg2: memref<8xi32, #tpu.memory_space<smem>>) -> (i32, i32, i32) {
    %c0_i32 = arith.constant 0 : i32
    %c0_i32_0 = arith.constant 0 : i32
    %c0_i32_1 = arith.constant 0 : i32
    return %arg0, %c0_i32, %c0_i32_0 : i32, i32, i32
  }
  func.func @transform_1(%arg0: i32, %arg1: memref<8xi32, #tpu.memory_space<smem>>, %arg2: memref<8xi32, #tpu.memory_space<smem>>) -> (i32, i32, i32) {
    %c0_i32 = arith.constant 0 : i32
    %c0_i32_0 = arith.constant 0 : i32
    %c0_i32_1 = arith.constant 0 : i32
    return %arg0, %c0_i32, %c0_i32_0 : i32, i32, i32
  }
}

</mosaic_0001>

<bundles_post_ra>
// kernel: tpu_custom_call.1
= control target key start
LH: loop header
LB: loop body
LE: loop exit
PB: predicated region body
PF: predicated region fallthrough
CT: control target
= control target key end

     0   :  { %s2142_s0 = inlined_call_operand.vmem [shape: s32[8], index: 0, kind: input, shape index: {}]   ;;  %s2143_s2 = inlined_call_operand.hbm [shape: f32[8,64,512], index: 2, kind: input, shape index: {}, may-alias: {2,3}]   ;;  %s2144_s3 = inlined_call_operand.hbm [shape: f32[8,64,512], index: 3, kind: output, shape index: {}, may-alias: {2,3}]   ;;  %s2145_s1 = inlined_call_operand.vmem [shape: s32[8], index: 1, kind: input, shape index: {}]  }
   0x1   :  { %s8_s14 = sshll.u32 %s2142_s0, 4  ;;  %s12_s17 = sshll.u32 %s2145_s1, 4  ;;  %s9_s14 = int_to_ptr.vmem [resolvable:$true] %s8_s14  ;;  %s13_s17 = int_to_ptr.vmem [resolvable:$true] %s12_s17 }
   0x2   :  { %s995_s18 = scalar_lea.vmem %s9_s14, 16  ;;  %p1000_p1 = scmp.lt.s32.totalorder %s9_s14, %s9_s14 }
   0x3   :  { %p996_p0 = scmp.ne.s32.totalorder %s9_s14, %s995_s18  ;;  %p1001_p2 = scmp.lt.s32.totalorder %s995_s18, %s995_s18 }
   0x5   :  { %p1002_p3 = por %p1001_p2, %p1000_p1 }
   0x7   :  { %p1003_p4 = pnand %p1002_p3, %p996_p0 }
   0x9   :  { %1006 = shalt.err (!%p1003_p4)  }
   0xa   :  { %s1069_s19 = smov [#allocation3]   ;;  %s1007_s20 = scalar_lea.vmem %s13_s17, 16 }
   0xb   :  { %11 = dma.vmem_to_smem %s9_s14, 16, %s1069_s19, [#allocation2] }
   0xc   :  { %p1008_p5 = scmp.ne.s32.totalorder %s13_s17, %s1007_s20  ;;  %p1012_p6 = scmp.lt.s32.totalorder %s13_s17, %s13_s17 }
   0xd   :  { %p1013_p7 = scmp.lt.s32.totalorder %s1007_s20, %s1007_s20 }
   0xf   :  { %p1014_p8 = por %p1013_p7, %p1012_p6 }
  0x11   :  { %p1015_p9 = pnand %p1014_p8, %p1008_p5 }
  0x13   :  { %1018 = shalt.err (!%p1015_p9)  }
  0x14   :  { %s1070_s0 = smov [#allocation4]  }
  0x15   :  { %15 = dma.vmem_to_smem %s13_s17, 16, %s1070_s0, [#allocation2] }
  0x16   :  { %1063 = dma.done.wait [#allocation2], 32 }
  0x17   :  { %1064 = vsyncadd [#allocation2], 4294967264 }
  0x18   :  { %17 = sfence }
  0x19   :  { %18 = vsyncpa [#allocation6], 0 }
  0x1a   :  { %19 = vsyncpa [#allocation7], 0  ;;  %s1071_s1 = smov [#allocation5]   ;;  %s1019_s24 = scalar_lea.hbm %s2143_s2, 32768 }
  0x1b   :  { %s25_s21 = sshll.u32 %s1071_s1, 4  ;;  %p1020_p10 = scmp.ne.s32.totalorder %s2143_s2, %s1019_s24  ;;  %s26_s21 = int_to_ptr.vmem [resolvable:$true] %s25_s21 }
  0x1c   :  { %p1023_p11 = scmp.lt.u32.totalorder %s1019_s24, %s2143_s2 }
  0x1e   :  { %p1025_p12 = pnand %p1023_p11, %p1020_p10 }
  0x20   :  { %1028 = shalt.err (!%p1025_p12)
}
  0x21   :  { %s1029_s29 = scalar_lea.vmem %s26_s21, 32768  ;;  %p1034_p0 = scmp.lt.s32.totalorder %s26_s21, %s26_s21 }
  0x22   :  { %p1030_p13 = scmp.ne.s32.totalorder %s26_s21, %s1029_s29  ;;  %p1035_p1 = scmp.lt.s32.totalorder %s1029_s29, %s1029_s29 }
  0x24   :  { %p1036_p2 = por %p1035_p1, %p1034_p0 }
  0x26   :  { %p1037_p3 = pnand %p1036_p2, %p1030_p13 }
  0x28   :  { %1040 = shalt.err (!%p1037_p3)
}
  0x29   :  { %s1072_s30 = smov 512   ;;  %s1073_s4 = smov 32  }
  0x2a   :  { %31 = dma.hbm_to_vmem [thread:$0]  %s2143_s2, 32768, %s26_s21, [#allocation6], %s1072_s30, %s1072_s30, %s1073_s4  }
  0x2b   :  { %1065 = dma.done.wait [#allocation6], 32768  }
  0x2c   :  { %1066 = vsyncadd [#allocation6], 4294934528  ;;  %v70_v0 = vlaneseq  ;;  %s36_s7 = sld [smem:[#allocation3]]  ;;  %s975_s9 = sld [smem:[#allocation3 + $0x1]]  ;;  %v38_v5 = vld [vmem:[#allocation5] sm:$0xff]  ;;  %v39_v8 = vld [vmem:[#allocation5 + $0x8] sm:$0xff] }
  0x2d   :  { %s37_s8 = sld [smem:[#allocation4]]  ;;  %s976_s10 = sld [smem:[#allocation4 + $0x1]]  ;;  %v40_v9 = vld [vmem:[#allocation5 + $0x10] sm:$0xff]  ;;  %v41_v10 = vld [vmem:[#allocation5 + $0x18] sm:$0xff]  ;;  %v42_v11 = vld [vmem:[#allocation5 + $0x20] sm:$0xff] }
  0x2e   :  { %v1116_v1 = vand.u32 127, %v70_v0  ;;  %v43_v12 = vld [vmem:[#allocation5 + $0x28] sm:$0xff]  ;;  %v44_v14 = vld [vmem:[#allocation5 + $0x30] sm:$0xff]  ;;  %v45_v15 = vld [vmem:[#allocation5 + $0x38] sm:$0xff]  ;;  %s1139_s2 = sld [smem:[#allocation3 + $0x2]]  ;;  %s1284_s12 = sld [smem:[#allocation3 + $0x3]] }
  0x2f   :  { %v46_v19 = vld [vmem:[#allocation5 + $0x40] sm:$0xff]  ;;  %v47_v20 = vld [vmem:[#allocation5 + $0x48] sm:$0xff]  ;;  %s1153_s11 = sld [smem:[#allocation4 + $0x2]]  ;;  %v48_v28 = vld [vmem:[#allocation5 + $0x50] sm:$0xff]  ;;  %s1297_s13 = sld [smem:[#allocation4 + $0x3]] }
  0x30   :  { %v1119_v2 = vadd.s32 128, %v1116_v1  ;;  %v1122_v3 = vadd.s32 256, %v1116_v1  ;;  %v1125_v4 = vadd.s32 384, %v1116_v1  ;;  %v49_v29 = vld [vmem:[#allocation5 + $0x58] sm:$0xff]  ;;  %v50_v34 = vld [vmem:[#allocation5 + $0x60] sm:$0xff]  ;;  %v51_v35 = vld [vmem:[#allocation5 + $0x68] sm:$0xff] }
  0x31   :  { %v52_v40 = vld [vmem:[#allocation5 + $0x70] sm:$0xff]  ;;  %v53_v41 = vld [vmem:[#allocation5 + $0x78] sm:$0xff]  ;;  %v54_v45 = vld [vmem:[#allocation5 + $0x80] sm:$0xff]  ;;  %s1411_s14 = sld [smem:[#allocation3 + $0x4]]  ;;  %s1541_s16 = sld [smem:[#allocation3 + $0x5]] }
  0x32   :  { %v75_v6 = vstv %s36_s7  ;;  %v1149_v21 = vstv %s975_s9  ;;  %v55_v46 = vld [vmem:[#allocation5 + $0x88] sm:$0xff]  ;;  %v56_v47 = vld [vmem:[#allocation5 + $0x90] sm:$0xff]  ;;  %v57_v51 = vld [vmem:[#allocation5 + $0x98] sm:$0xff]  ;;  %s1430_s15 = sld [smem:[#allocation4 + $0x4]]  ;;  %s1560_s17 = sld [smem:[#allocation4 + $0x5]] }
  0x33   :  { %v80_v7 = vstv %s37_s8  ;;  %vm76_vm0 = vcmp.ge.s32.totalorder %v1116_v1, %v75_v6  ;;  %vm77_vm2 = vcmp.ge.s32.totalorder %v1119_v2, %v75_v6  ;;  %vm78_vm5 = vcmp.ge.s32.totalorder %v1122_v3, %v75_v6  ;;  %v58_v52 = vld [vmem:[#allocation5 + $0xa0] sm:$0xff]  ;;  %v59_v53 = vld [vmem:[#allocation5 + $0xa8] sm:$0xff]  ;;  %v60_v57 = vld [vmem:[#allocation5 + $0xb0] sm:$0xff]  ;;  %s1671_s18 = sld [smem:[#allocation3 + $0x6]]  ;;  %s1801_s20 = sld [smem:[#allocation3 + $0x7]] }
  0x34   :  { %vm81_vm1 = vcmp.lt.s32.totalorder %v1116_v1, %v80_v7  ;;  %vm82_vm3 = vcmp.lt.s32.totalorder %v1119_v2, %v80_v7  ;;  %vm83_vm6 = vcmp.lt.s32.totalorder %v1122_v3, %v80_v7  ;;  %vm79_vm7 = vcmp.ge.s32.totalorder %v1125_v4, %v75_v6  ;;  %v61_v58 = vld [vmem:[#allocation5 + $0xb8] sm:$0xff]  ;;  %v62_v59 = vld [vmem:[#allocation5 + $0xc0] sm:$0xff]  ;;  %v63_v63 = vld [vmem:[#allocation5 + $0xc8] sm:$0xff]  ;;  %s1690_s19 = sld [smem:[#allocation4 + $0x6]]  ;;  %s1820_s0 = sld [smem:[#allocation4 + $0x7]] }
  0x35   :  { %vm1131_vm4 = vmand %vm76_vm0, %vm81_vm1  ;;  %vm84_vm8 = vcmp.lt.s32.totalorder %v1125_v4, %v80_v7  ;;  %v1151_v22 = vstv %s976_s10  ;;  %vm190_vm12 = vcmp.ge.s32.totalorder %v1116_v1, %v1149_v21  ;;  %vm191_vm14 = vcmp.ge.s32.totalorder %v1119_v2, %v1149_v21  ;;  %v64_v0 = vld [vmem:[#allocation5 + $0xd0] sm:$0xff]  ;;  %s1074_s1 = smov [#allocation8]  }
  0x36   :  { %v89_v16 = vsel %vm1131_vm4, 0.0, %v38_v5  ;;  %vm1143_vm9 = vmand %vm77_vm2, %vm82_vm3  ;;  %v93_v18 = vsel %vm1131_vm4, 0.0, %v42_v11  ;;  %v97_v26 = vsel %vm1131_vm4, 0.0, %v46_v19  ;;  %v101_v39 = vsel %vm1131_vm4, 0.0, %v50_v34  ;;  %v65_v5 = vld [vmem:[#allocation5 + $0xd8] sm:$0xff]  ;;  %v68_v11 = vld [vmem:[#allocation5 + $0xf0] sm:$0xff] }
  0x37   :  { %121 = vst [vmem:[#allocation8] sm:$0xff] %v89_v16  ;;  %v90_v23 = vsel %vm1143_vm9, 0.0, %v39_v8  ;;  %vm1161_vm10 = vmand %vm78_vm5, %vm83_vm6  ;;  %v94_v25 = vsel %vm1143_vm9, 0.0, %v43_v12  ;;  %v98_v27 = vsel %vm1143_vm9, 0.0, %v47_v20  ;;  %v102_v42 = vsel %vm1143_vm9, 0.0, %v51_v35  ;;  %v69_v16 = vld [vmem:[#allocation5 + $0xf8] sm:$0xff] }
  0x38   :  { %125 = vst [vmem:[#allocation8 + $0x20] sm:$0xff] %v93_v18  ;;  %122 = vst [vmem:[#allocation8 + $0x8] sm:$0xff] %v90_v23  ;;  %v91_v30 = vsel %vm1161_vm10, 0.0, %v40_v9  ;;  %v95_v32 = vsel %vm1161_vm10, 0.0, %v44_v14  ;;  %v99_v33 = vsel %vm1161_vm10, 0.0, %v48_v28  ;;  %v103_v43 = vsel %vm1161_vm10, 0.0, %v52_v40 }
  0x39   :  { %vm1177_vm11 = vmand %vm79_vm7, %vm84_vm8  ;;  %126 = vst [vmem:[#allocation8 + $0x28] sm:$0xff] %v94_v25  ;;  %vm195_vm13 = vcmp.lt.s32.totalorder %v1116_v1, %v1151_v22  ;;  %v105_v48 = vsel %vm1131_vm4, 0.0, %v54_v45  ;;  %v106_v49 = vsel %vm1143_vm9, 0.0, %v55_v46  ;;  %v107_v50 = vsel %vm1161_vm10, 0.0, %v56_v47  ;;  %v66_v9 = vld [vmem:[#allocation5 + $0xe0] sm:$0xff]  ;;  %v158_v20 = vld [vmem:[#allocation5 + $0x108] sm:$0xff] }
  0x3a   :  { %129 = vst [vmem:[#allocation8 + $0x40] sm:$0xff] %v97_v26  ;;  %130 = vst [vmem:[#allocation8 + $0x48] sm:$0xff] %v98_v27  ;;  %v92_v36 = vsel %vm1177_vm11, 0.0, %v41_v10  ;;  %v96_v37 = vsel %vm1177_vm11, 0.0, %v45_v15  ;;  %v100_v38 = vsel %vm1177_vm11, 0.0, %v49_v29  ;;  %v104_v44 = vsel %vm1177_vm11, 0.0, %v53_v41 }
  0x3b   :  { %123 = vst [vmem:[#allocation8 + $0x10] sm:$0xff] %v91_v30  ;;  %127 = vst [vmem:[#allocation8 + $0x30] sm:$0xff] %v95_v32  ;;  %v108_v54 = vsel %vm1177_vm11, 0.0, %v57_v51  ;;  %v109_v55 = vsel %vm1131_vm4, 0.0, %v58_v52  ;;  %v110_v56 = vsel %vm1143_vm9, 0.0, %v59_v53  ;;  %vm196_vm15 = vcmp.lt.s32.totalorder %v1119_v2, %v1151_v22  ;;  %v67_v10 = vld [vmem:[#allocation5 + $0xe8] sm:$0xff] }
  0x3c   :  { %131 = vst [vmem:[#allocation8 + $0x50] sm:$0xff] %v99_v33  ;;  %124 = vst [vmem:[#allocation8 + $0x18] sm:$0xff] %v92_v36  ;;  %v111_v60 = vsel %vm1161_vm10, 0.0, %v60_v57  ;;  %v112_v61 = vsel %vm1177_vm11, 0.0, %v61_v58  ;;  %v113_v62 = vsel %vm1131_vm4, 0.0, %v62_v59  ;;  %vm192_vm0 = vcmp.ge.s32.totalorder %v1122_v3, %v1149_v21  ;;  %v157_v18 = vld [vmem:[#allocation5 + $0x100] sm:$0xff] }
  0x3d   :  { %128 = vst [vmem:[#allocation8 + $0x38] sm:$0xff] %v96_v37  ;;  %132 = vst [vmem:[#allocation8 + $0x58] sm:$0xff] %v100_v38  ;;  %v114_v6 = vsel %vm1143_vm9, 0.0, %v63_v63  ;;  %v115_v7 = vsel %vm1161_vm10, 0.0, %v64_v0  ;;  %v116_v8 = vsel %vm1177_vm11, 0.0, %v65_v5  ;;  %vm197_vm1 = vcmp.lt.s32.totalorder %v1122_v3, %v1151_v22  ;;  %v159_v24 = vld [vmem:[#allocation5 + $0x110] sm:$0xff] }
  0x3e   :  { %133 = vst [vmem:[#allocation8 + $0x60] sm:$0xff] %v101_v39  ;;  %134 = vst [vmem:[#allocation8 + $0x68] sm:$0xff] %v102_v42  ;;  %v117_v12 = vsel %vm1131_vm4, 0.0, %v66_v9  ;;  %v118_v14 = vsel %vm1143_vm9, 0.0, %v67_v10  ;;  %v119_v15 = vsel %vm1161_vm10, 0.0, %v68_v11  ;;  %vm193_vm3 = vcmp.ge.s32.totalorder %v1125_v4, %v1149_v21  ;;  %v160_v27 = vld [vmem:[#allocation5 + $0x118] sm:$0xff] }
  0x3f   :  { %135 = vst [vmem:[#allocation8 + $0x70] sm:$0xff] %v103_v43  ;;  %136 = vst [vmem:[#allocation8 + $0x78] sm:$0xff] %v104_v44  ;;  %v120_v13 = vsel %vm1177_vm11, 0.0, %v69_v16  ;;  %vm198_vm5 = vcmp.lt.s32.totalorder %v1125_v4, %v1151_v22  ;;  %v161_v28 = vld [vmem:[#allocation5 + $0x120] sm:$0xff]  ;;  %v1282_v29 = vstv %s1139_s2  ;;  %v162_v32 = vld [vmem:[#allocation5 + $0x128] sm:$0xff]  ;;  %v1306_v39 = vstv %s1153_s11  ;;  %s2068_s21 = sshll.u32 %s1074_s1, 4  ;;  %s964_s21 = int_to_ptr.vmem [resolvable:$true] %s2068_s21 }
  0x40   :  { %137 = vst [vmem:[#allocation8 + $0x80] sm:$0xff] %v105_v48  ;;  %138 = vst [vmem:[#allocation8 + $0x88] sm:$0xff] %v106_v49  ;;  %v163_v33 = vld [vmem:[#allocation5 + $0x130] sm:$0xff]  ;;  %v164_v36 = vld [vmem:[#allocation5 + $0x138] sm:$0xff]  ;;  %vm305_vm8 = vcmp.ge.s32.totalorder %v1116_v1, %v1282_v29  ;;  %vm306_vm9 = vcmp.ge.s32.totalorder %v1119_v2, %v1282_v29  ;;  %vm310_vm10 = vcmp.lt.s32.totalorder %v1116_v1, %v1306_v39  ;;  %s1041_s22 = scalar_lea.vmem %s964_s21, 32768  ;;  %p1046_p5 = scmp.lt.s32.totalorder %s964_s21, %s964_s21 }
  0x41   :  { %139 = vst [vmem:[#allocation8 + $0x90] sm:$0xff] %v107_v50  ;;  %140 = vst [vmem:[#allocation8 + $0x98] sm:$0xff] %v108_v54  ;;  %v165_v37 = vld [vmem:[#allocation5 + $0x140] sm:$0xff]  ;;  %v166_v38 = vld [vmem:[#allocation5 + $0x148] sm:$0xff]  ;;  %vm311_vm11 = vcmp.lt.s32.totalorder %v1119_v2, %v1306_v39  ;;  %p1042_p4 = scmp.ne.s32.totalorder %s964_s21, %s1041_s22  ;;  %p1047_p6 = scmp.lt.s32.totalorder %s1041_s22, %s1041_s22 }
  0x42   :  { %141 = vst [vmem:[#allocation8 + $0xa0] sm:$0xff] %v109_v55  ;;  %142 = vst [vmem:[#allocation8 + $0xa8] sm:$0xff] %v110_v56  ;;  %v167_v43 = vld [vmem:[#allocation5 + $0x150] sm:$0xff]  ;;  %v168_v44 = vld [vmem:[#allocation5 + $0x158] sm:$0xff] }
  0x43   :  { %143 = vst [vmem:[#allocation8 + $0xb0] sm:$0xff] %v111_v60  ;;  %144 = vst [vmem:[#allocation8 + $0xb8] sm:$0xff] %v112_v61  ;;  %v169_v45 = vld [vmem:[#allocation5 + $0x160] sm:$0xff]  ;;  %v170_v49 = vld [vmem:[#allocation5 + $0x168] sm:$0xff]  ;;  %p1048_p7 = por %p1047_p6, %p1046_p5 }
  0x44   :  { %145 = vst [vmem:[#allocation8 + $0xc0] sm:$0xff] %v113_v62  ;;  %146 = vst [vmem:[#allocation8 + $0xc8] sm:$0xff] %v114_v6  ;;  %v171_v50 = vld [vmem:[#allocation5 + $0x170] sm:$0xff]  ;;  %v172_v51 = vld [vmem:[#allocation5 + $0x178] sm:$0xff] }
  0x45   :  { %147 = vst [vmem:[#allocation8 + $0xd0] sm:$0xff] %v115_v7  ;;  %148 = vst [vmem:[#allocation8 + $0xd8] sm:$0xff] %v116_v8  ;;  %v173_v55 = vld [vmem:[#allocation5 + $0x180] sm:$0xff]  ;;  %v174_v56 = vld [vmem:[#allocation5 + $0x188] sm:$0xff]  ;;  %p1049_p8 = pnand %p1048_p7, %p1042_p4 }
  0x46   :  { %vm1247_vm2 = vmand %vm190_vm12, %vm195_vm13  ;;  %149 = vst [vmem:[#allocation8 + $0xe0] sm:$0xff] %v117_v12  ;;  %v175_v57 = vld [vmem:[#allocation5 + $0x190] sm:$0xff]  ;;  %v176_v61 = vld [vmem:[#allocation5 + $0x198] sm:$0xff]  ;;  %vm307_vm12 = vcmp.ge.s32.totalorder %v1122_v3, %v1282_v29  ;;  %vm312_vm13 = vcmp.lt.s32.totalorder %v1122_v3, %v1306_v39 }
  0x47   :  { %150 = vst [vmem:[#allocation8 + $0xe8] sm:$0xff] %v118_v14  ;;  %151 = vst [vmem:[#allocation8 + $0xf0] sm:$0xff] %v119_v15  ;;  %v203_v17 = vsel %vm1247_vm2, 0.0, %v157_v18  ;;  %v207_v31 = vsel %vm1247_vm2, 0.0, %v161_v28  ;;  %v211_v41 = vsel %vm1247_vm2, 0.0, %v165_v37  ;;  %v215_v48 = vsel %vm1247_vm2, 0.0, %v169_v45 }
  0x48   :  { %vm1263_vm4 = vmand %vm191_vm14, %vm196_vm15  ;;  %152 = vst [vmem:[#allocation8 + $0xf8] sm:$0xff] %v120_v13  ;;  %v219_v58 = vsel %vm1247_vm2, 0.0, %v173_v55  ;;  %v177_v62 = vld [vmem:[#allocation5 + $0x1a0] sm:$0xff]  ;;  %v178_v63 = vld [vmem:[#allocation5 + $0x1a8] sm:$0xff]  ;;  %vm308_vm14 = vcmp.ge.s32.totalorder %v1125_v4, %v1282_v29  ;;  %v1428_v45 = vstv %s1297_s13 }
  0x49   :  { %236 = vst [vmem:[#allocation8 + $0x100] sm:$0xff] %v203_v17  ;;  %v204_v25 = vsel %vm1263_vm4, 0.0, %v158_v20  ;;  %vm1277_vm6 = vmand %vm192_vm0, %vm197_vm1  ;;  %v208_v35 = vsel %vm1263_vm4, 0.0, %v162_v32  ;;  %v212_v42 = vsel %vm1263_vm4, 0.0, %v166_v38  ;;  %v216_v52 = vsel %vm1263_vm4, 0.0, %v170_v49  ;;  %v179_v7 = vld [vmem:[#allocation5 + $0x1b0] sm:$0xff] }
  0x4a   :  { %237 = vst [vmem:[#allocation8 + $0x108] sm:$0xff] %v204_v25  ;;  %v205_v30 = vsel %vm1277_vm6, 0.0, %v159_v24  ;;  %vm1291_vm7 = vmand %vm193_vm3, %vm198_vm5  ;;  %v209_v21 = vsel %vm1277_vm6, 0.0, %v163_v33  ;;  %v213_v46 = vsel %vm1277_vm6, 0.0, %v167_v43  ;;  %v217_v53 = vsel %vm1277_vm6, 0.0, %v171_v50  ;;  %v180_v8 = vld [vmem:[#allocation5 + $0x1b8] sm:$0xff] }
  0x4b   :  { %238 = vst [vmem:[#allocation8 + $0x110] sm:$0xff] %v205_v30  ;;  %v206_v34 = vsel %vm1291_vm7, 0.0, %v160_v27  ;;  %240 = vst [vmem:[#allocation8 + $0x120] sm:$0xff] %v207_v31  ;;  %v210_v40 = vsel %vm1291_vm7, 0.0, %v164_v36  ;;  %v214_v47 = vsel %vm1291_vm7, 0.0, %v168_v44  ;;  %v218_v54 = vsel %vm1291_vm7, 0.0, %v172_v51 }
  0x4c   :  { %239 = vst [vmem:[#allocation8 + $0x118] sm:$0xff] %v206_v34  ;;  %241 = vst [vmem:[#allocation8 + $0x128] sm:$0xff] %v208_v35  ;;  %v220_v59 = vsel %vm1263_vm4, 0.0, %v174_v56  ;;  %v221_v60 = vsel %vm1277_vm6, 0.0, %v175_v57  ;;  %v222_v0 = vsel %vm1291_vm7, 0.0, %v176_v61  ;;  %v223_v5 = vsel %vm1247_vm2, 0.0, %v177_v62 }
  0x4d   :  { %242 = vst [vmem:[#allocation8 + $0x130] sm:$0xff] %v209_v21  ;;  %243 = vst [vmem:[#allocation8 + $0x138] sm:$0xff] %v210_v40  ;;  %v224_v6 = vsel %vm1263_vm4, 0.0, %v178_v63  ;;  %v181_v9 = vld [vmem:[#allocation5 + $0x1c0] sm:$0xff]  ;;  %v225_v10 = vsel %vm1277_vm6, 0.0, %v179_v7  ;;  %v226_v11 = vsel %vm1291_vm7, 0.0, %v180_v8  ;;  %vm313_vm0 = vcmp.lt.s32.totalorder %v1125_v4, %v1306_v39 }
  0x4e   :  { %244 = vst [vmem:[#allocation8 + $0x140] sm:$0xff] %v211_v41  ;;  %245 = vst [vmem:[#allocation8 + $0x148] sm:$0xff] %v212_v42  ;;  %v227_v12 = vsel %vm1247_vm2, 0.0, %v181_v9  ;;  %v182_v14 = vld [vmem:[#allocation5 + $0x1c8] sm:$0xff]  ;;  %v183_v15 = vld [vmem:[#allocation5 + $0x1d0] sm:$0xff]  ;;  %v1409_v38 = vstv %s1284_s12  ;;  %vm425_vm5 = vcmp.lt.s32.totalorder %v1116_v1, %v1428_v45 }
  0x4f   :  { %246 = vst [vmem:[#allocation8 + $0x150] sm:$0xff] %v213_v46  ;;  %247 = vst [vmem:[#allocation8 + $0x158] sm:$0xff] %v214_v47  ;;  %v184_v16 = vld [vmem:[#allocation5 + $0x1d8] sm:$0xff]  ;;  %v228_v18 = vsel %vm1263_vm4, 0.0, %v182_v14  ;;  %v229_v13 = vsel %vm1277_vm6, 0.0, %v183_v15  ;;  %v185_v20 = vld [vmem:[#allocation5 + $0x1e0] sm:$0xff] }
  0x50   :  { %248 = vst [vmem:[#allocation8 + $0x160] sm:$0xff] %v215_v48  ;;  %249 = vst [vmem:[#allocation8 + $0x168] sm:$0xff] %v216_v52  ;;  %v230_v17 = vsel %vm1291_vm7, 0.0, %v184_v16  ;;  %v186_v24 = vld [vmem:[#allocation5 + $0x1e8] sm:$0xff]  ;;  %v187_v25 = vld [vmem:[#allocation5 + $0x1f0] sm:$0xff]  ;;  %v231_v27 = vsel %vm1247_vm2, 0.0, %v185_v20 }
  0x51   :  { %250 = vst [vmem:[#allocation8 + $0x170] sm:$0xff] %v217_v53  ;;  %251 = vst [vmem:[#allocation8 + $0x178] sm:$0xff] %v218_v54  ;;  %v232_v28 = vsel %vm1263_vm4, 0.0, %v186_v24  ;;  %v233_v30 = vsel %vm1277_vm6, 0.0, %v187_v25  ;;  %v188_v31 = vld [vmem:[#allocation5 + $0x1f8] sm:$0xff]  ;;  %v272_v32 = vld [vmem:[#allocation5 + $0x200] sm:$0xff]  ;;  %vm420_vm4 = vcmp.ge.s32.totalorder %v1116_v1, %v1409_v38  ;;  %vm421_vm6 = vcmp.ge.s32.totalorder %v1119_v2, %v1409_v38 }
  0x52   :  { %252 = vst [vmem:[#allocation8 + $0x180] sm:$0xff] %v219_v58  ;;  %253 = vst [vmem:[#allocation8 + $0x188] sm:$0xff] %v220_v59  ;;  %v234_v19 = vsel %vm1291_vm7, 0.0, %v188_v31  ;;  %v273_v26 = vld [vmem:[#allocation5 + $0x208] sm:$0xff]  ;;  %v274_v35 = vld [vmem:[#allocation5 + $0x210] sm:$0xff]  ;;  %vm426_vm7 = vcmp.lt.s32.totalorder %v1119_v2, %v1428_v45 }
  0x53   :  { %254 = vst [vmem:[#allocation8 + $0x190] sm:$0xff] %v221_v60  ;;  %255 = vst [vmem:[#allocation8 + $0x198] sm:$0xff] %v222_v0  ;;  %v275_v36 = vld [vmem:[#allocation5 + $0x218] sm:$0xff]  ;;  %v276_v37 = vld [vmem:[#allocation5 + $0x220] sm:$0xff] }
  0x54   :  { %256 = vst [vmem:[#allocation8 + $0x1a0] sm:$0xff] %v223_v5  ;;  %257 = vst [vmem:[#allocation8 + $0x1a8] sm:$0xff] %v224_v6  ;;  %v277_v43 = vld [vmem:[#allocation5 + $0x228] sm:$0xff]  ;;  %v278_v44 = vld [vmem:[#allocation5 + $0x230] sm:$0xff] }
  0x55   :  { %258 = vst [vmem:[#allocation8 + $0x1b0] sm:$0xff] %v225_v10  ;;  %259 = vst [vmem:[#allocation8 + $0x1b8] sm:$0xff] %v226_v11  ;;  %v279_v47 = vld [vmem:[#allocation5 + $0x238] sm:$0xff]  ;;  %v280_v48 = vld [vmem:[#allocation5 + $0x240] sm:$0xff] }
  0x56   :  { %260 = vst [vmem:[#allocation8 + $0x1c0] sm:$0xff] %v227_v12  ;;  %261 = vst [vmem:[#allocation8 + $0x1c8] sm:$0xff] %v228_v18  ;;  %v281_v49 = vld [vmem:[#allocation5 + $0x248] sm:$0xff]  ;;  %v282_v53 = vld [vmem:[#allocation5 + $0x250] sm:$0xff] }
  0x57   :  { %262 = vst [vmem:[#allocation8 + $0x1d0] sm:$0xff] %v229_v13  ;;  %263 = vst [vmem:[#allocation8 + $0x1d8] sm:$0xff] %v230_v17  ;;  %v283_v54 = vld [vmem:[#allocation5 + $0x258] sm:$0xff]  ;;  %v284_v55 = vld [vmem:[#allocation5 + $0x260] sm:$0xff] }
  0x58   :  { %vm1376_vm15 = vmand %vm305_vm8, %vm310_vm10  ;;  %264 = vst [vmem:[#allocation8 + $0x1e0] sm:$0xff] %v231_v27  ;;  %v285_v59 = vld [vmem:[#allocation5 + $0x268] sm:$0xff]  ;;  %v286_v60 = vld [vmem:[#allocation5 + $0x270] sm:$0xff]  ;;  %vm422_vm8 = vcmp.ge.s32.totalorder %v1122_v3, %v1409_v38  ;;  %vm423_vm10 = vcmp.ge.s32.totalorder %v1125_v4, %v1409_v38 }
  0x59   :  { %265 = vst [vmem:[#allocation8 + $0x1e8] sm:$0xff] %v232_v28  ;;  %266 = vst [vmem:[#allocation8 + $0x1f0] sm:$0xff] %v233_v30  ;;  %v318_v23 = vsel %vm1376_vm15, 0.0, %v272_v32  ;;  %v322_v42 = vsel %vm1376_vm15, 0.0, %v276_v37  ;;  %v326_v51 = vsel %vm1376_vm15, 0.0, %v280_v48  ;;  %v330_v58 = vsel %vm1376_vm15, 0.0, %v284_v55 }
  0x5a   :  { %vm1392_vm1 = vmand %vm306_vm9, %vm311_vm11  ;;  %267 = vst [vmem:[#allocation8 + $0x1f8] sm:$0xff] %v234_v19  ;;  %v287_v61 = vld [vmem:[#allocation5 + $0x278] sm:$0xff]  ;;  %v288_v5 = vld [vmem:[#allocation5 + $0x280] sm:$0xff]  ;;  %vm427_vm9 = vcmp.lt.s32.totalorder %v1122_v3, %v1428_v45  ;;  %v1558_v55 = vstv %s1430_s15 }
  0x5b   :  { %351 = vst [vmem:[#allocation8 + $0x200] sm:$0xff] %v318_v23  ;;  %v319_v22 = vsel %vm1392_vm1, 0.0, %v273_v26  ;;  %vm1404_vm2 = vmand %vm307_vm12, %vm312_vm13  ;;  %v323_v29 = vsel %vm1392_vm1, 0.0, %v277_v43  ;;  %v327_v52 = vsel %vm1392_vm1, 0.0, %v281_v49  ;;  %v331_v62 = vsel %vm1392_vm1, 0.0, %v285_v59  ;;  %v289_v6 = vld [vmem:[#allocation5 + $0x288] sm:$0xff] }
  0x5c   :  { %352 = vst [vmem:[#allocation8 + $0x208] sm:$0xff] %v319_v22  ;;  %v320_v40 = vsel %vm1404_vm2, 0.0, %v274_v35  ;;  %vm1421_vm3 = vmand %vm308_vm14, %vm313_vm0  ;;  %v324_v46 = vsel %vm1404_vm2, 0.0, %v278_v44  ;;  %v328_v56 = vsel %vm1404_vm2, 0.0, %v282_v53  ;;  %v332_v63 = vsel %vm1404_vm2, 0.0, %v286_v60  ;;  %v290_v7 = vld [vmem:[#allocation5 + $0x290] sm:$0xff] }
  0x5d   :  { %353 = vst [vmem:[#allocation8 + $0x210] sm:$0xff] %v320_v40  ;;  %v321_v39 = vsel %vm1421_vm3, 0.0, %v275_v36  ;;  %355 = vst [vmem:[#allocation8 + $0x220] sm:$0xff] %v322_v42  ;;  %v325_v50 = vsel %vm1421_vm3, 0.0, %v279_v47  ;;  %v329_v57 = vsel %vm1421_vm3, 0.0, %v283_v54  ;;  %v333_v0 = vsel %vm1421_vm3, 0.0, %v287_v61 }
  0x5e   :  { %354 = vst [vmem:[#allocation8 + $0x218] sm:$0xff] %v321_v39  ;;  %356 = vst [vmem:[#allocation8 + $0x228] sm:$0xff] %v323_v29  ;;  %v334_v8 = vsel %vm1376_vm15, 0.0, %v288_v5  ;;  %v335_v9 = vsel %vm1392_vm1, 0.0, %v289_v6  ;;  %v336_v10 = vsel %vm1404_vm2, 0.0, %v290_v7  ;;  %v291_v11 = vld [vmem:[#allocation5 + $0x298] sm:$0xff]  ;;  %vm428_vm12 = vcmp.lt.s32.totalorder %v1125_v4, %v1428_v45 }
  0x5f   :  { %357 = vst [vmem:[#allocation8 + $0x230] sm:$0xff] %v324_v46  ;;  %358 = vst [vmem:[#allocation8 + $0x238] sm:$0xff] %v325_v50  ;;  %v292_v12 = vld [vmem:[#allocation5 + $0x2a0] sm:$0xff]  ;;  %v293_v14 = vld [vmem:[#allocation5 + $0x2a8] sm:$0xff]  ;;  %v337_v15 = vsel %vm1421_vm3, 0.0, %v291_v11  ;;  %v1539_v49 = vstv %s1411_s14 }
  0x60   :  { %359 = vst [vmem:[#allocation8 + $0x240] sm:$0xff] %v326_v51  ;;  %360 = vst [vmem:[#allocation8 + $0x248] sm:$0xff] %v327_v52  ;;  %v338_v16 = vsel %vm1376_vm15, 0.0, %v292_v12  ;;  %v339_v18 = vsel %vm1392_vm1, 0.0, %v293_v14  ;;  %v294_v13 = vld [vmem:[#allocation5 + $0x2b0] sm:$0xff]  ;;  %v295_v17 = vld [vmem:[#allocation5 + $0x2b8] sm:$0xff]  ;;  %vm535_vm0 = vcmp.ge.s32.totalorder %v1116_v1, %v1539_v49 }
  0x61   :  { %361 = vst [vmem:[#allocation8 + $0x250] sm:$0xff] %v328_v56  ;;  %362 = vst [vmem:[#allocation8 + $0x258] sm:$0xff] %v329_v57  ;;  %v296_v20 = vld [vmem:[#allocation5 + $0x2c0] sm:$0xff]  ;;  %v340_v24 = vsel %vm1404_vm2, 0.0, %v294_v13  ;;  %v341_v25 = vsel %vm1421_vm3, 0.0, %v295_v17  ;;  %v297_v28 = vld [vmem:[#allocation5 + $0x2c8] sm:$0xff] }
  0x62   :  { %363 = vst [vmem:[#allocation8 + $0x260] sm:$0xff] %v330_v58  ;;  %364 = vst [vmem:[#allocation8 + $0x268] sm:$0xff] %v331_v62  ;;  %v342_v27 = vsel %vm1376_vm15, 0.0, %v296_v20  ;;  %v298_v30 = vld [vmem:[#allocation5 + $0x2d0] sm:$0xff]  ;;  %v299_v31 = vld [vmem:[#allocation5 + $0x2d8] sm:$0xff]  ;;  %v343_v32 = vsel %vm1392_vm1, 0.0, %v297_v28 }
  0x63   :  { %365 = vst [vmem:[#allocation8 + $0x270] sm:$0xff] %v332_v63  ;;  %366 = vst [vmem:[#allocation8 + $0x278] sm:$0xff] %v333_v0  ;;  %v344_v19 = vsel %vm1404_vm2, 0.0, %v298_v30  ;;  %v345_v23 = vsel %vm1421_vm3, 0.0, %v299_v31  ;;  %v300_v26 = vld [vmem:[#allocation5 + $0x2e0] sm:$0xff]  ;;  %v301_v35 = vld [vmem:[#allocation5 + $0x2e8] sm:$0xff] }
  0x64   :  { %367 = vst [vmem:[#allocation8 + $0x280] sm:$0xff] %v334_v8  ;;  %368 = vst [vmem:[#allocation8 + $0x288] sm:$0xff] %v335_v9  ;;  %v302_v22 = vld [vmem:[#allocation5 + $0x2f0] sm:$0xff]  ;;  %v346_v36 = vsel %vm1376_vm15, 0.0, %v300_v26  ;;  %v347_v37 = vsel %vm1392_vm1, 0.0, %v301_v35  ;;  %v303_v42 = vld [vmem:[#allocation5 + $0x2f8] sm:$0xff]  ;;  %vm540_vm1 = vcmp.lt.s32.totalorder %v1116_v1, %v1558_v55 }
  0x65   :  { %369 = vst [vmem:[#allocation8 + $0x290] sm:$0xff] %v336_v10  ;;  %370 = vst [vmem:[#allocation8 + $0x298] sm:$0xff] %v337_v15  ;;  %v348_v40 = vsel %vm1404_vm2, 0.0, %v302_v22  ;;  %v387_v43 = vld [vmem:[#allocation5 + $0x300] sm:$0xff]  ;;  %v349_v33 = vsel %vm1421_vm3, 0.0, %v303_v42  ;;  %v388_v21 = vld [vmem:[#allocation5 + $0x308] sm:$0xff]  ;;  %vm536_vm2 = vcmp.ge.s32.totalorder %v1119_v2, %v1539_v49  ;;  %vm541_vm3 = vcmp.lt.s32.totalorder %v1119_v2, %v1558_v55 }
  0x66   :  { %371 = vst [vmem:[#allocation8 + $0x2a0] sm:$0xff] %v338_v16  ;;  %372 = vst [vmem:[#allocation8 + $0x2a8] sm:$0xff] %v339_v18  ;;  %v389_v29 = vld [vmem:[#allocation5 + $0x310] sm:$0xff]  ;;  %v390_v47 = vld [vmem:[#allocation5 + $0x318] sm:$0xff] }
  0x67   :  { %373 = vst [vmem:[#allocation8 + $0x2b0] sm:$0xff] %v340_v24  ;;  %374 = vst [vmem:[#allocation8 + $0x2b8] sm:$0xff] %v341_v25  ;;  %v391_v48 = vld [vmem:[#allocation5 + $0x320] sm:$0xff]  ;;  %v392_v53 = vld [vmem:[#allocation5 + $0x328] sm:$0xff] }
  0x68   :  { %375 = vst [vmem:[#allocation8 + $0x2c0] sm:$0xff] %v342_v27  ;;  %376 = vst [vmem:[#allocation8 + $0x2c8] sm:$0xff] %v343_v32  ;;  %v393_v54 = vld [vmem:[#allocation5 + $0x330] sm:$0xff]  ;;  %v394_v57 = vld [vmem:[#allocation5 + $0x338] sm:$0xff] }
  0x69   :  { %377 = vst [vmem:[#allocation8 + $0x2d0] sm:$0xff] %v344_v19  ;;  %378 = vst [vmem:[#allocation8 + $0x2d8] sm:$0xff] %v345_v23  ;;  %v395_v58 = vld [vmem:[#allocation5 + $0x340] sm:$0xff]  ;;  %v396_v59 = vld [vmem:[#allocation5 + $0x348] sm:$0xff] }
  0x6a   :  { %vm1506_vm11 = vmand %vm420_vm4, %vm425_vm5  ;;  %379 = vst [vmem:[#allocation8 + $0x2e0] sm:$0xff] %v346_v36  ;;  %v397_v63 = vld [vmem:[#allocation5 + $0x350] sm:$0xff]  ;;  %v398_v0 = vld [vmem:[#allocation5 + $0x358] sm:$0xff]  ;;  %vm537_vm4 = vcmp.ge.s32.totalorder %v1122_v3, %v1539_v49  ;;  %vm542_vm5 = vcmp.lt.s32.totalorder %v1122_v3, %v1558_v55 }
  0x6b   :  { %380 = vst [vmem:[#allocation8 + $0x2e8] sm:$0xff] %v347_v37  ;;  %381 = vst [vmem:[#allocation8 + $0x2f0] sm:$0xff] %v348_v40  ;;  %v433_v34 = vsel %vm1506_vm11, 0.0, %v387_v43  ;;  %v437_v52 = vsel %vm1506_vm11, 0.0, %v391_v48  ;;  %v441_v61 = vsel %vm1506_vm11, 0.0, %v395_v58  ;;  %v399_v5 = vld [vmem:[#allocation5 + $0x360] sm:$0xff] }
  0x6c   :  { %vm1522_vm13 = vmand %vm421_vm6, %vm426_vm7  ;;  %382 = vst [vmem:[#allocation8 + $0x2f8] sm:$0xff] %v349_v33  ;;  %v445_v8 = vsel %vm1506_vm11, 0.0, %v399_v5  ;;  %v400_v9 = vld [vmem:[#allocation5 + $0x368] sm:$0xff]  ;;  %v401_v10 = vld [vmem:[#allocation5 + $0x370] sm:$0xff]  ;;  %vm538_vm6 = vcmp.ge.s32.totalorder %v1125_v4, %v1539_v49  ;;  %v1688_v5 = vstv %s1560_s17 }
  0x6d   :  { %466 = vst [vmem:[#allocation8 + $0x300] sm:$0xff] %v433_v34  ;;  %v434_v41 = vsel %vm1522_vm13, 0.0, %v388_v21  ;;  %vm1534_vm14 = vmand %vm422_vm8, %vm427_vm9  ;;  %v438_v38 = vsel %vm1522_vm13, 0.0, %v392_v53  ;;  %v442_v62 = vsel %vm1522_vm13, 0.0, %v396_v59  ;;  %v402_v11 = vld [vmem:[#allocation5 + $0x378] sm:$0xff]  ;;  %v446_v12 = vsel %vm1522_vm13, 0.0, %v400_v9 }
  0x6e   :  { %467 = vst [vmem:[#allocation8 + $0x308] sm:$0xff] %v434_v41  ;;  %v435_v50 = vsel %vm1534_vm14, 0.0, %v389_v29  ;;  %vm1551_vm15 = vmand %vm423_vm10, %vm428_vm12  ;;  %v439_v56 = vsel %vm1534_vm14, 0.0, %v393_v54  ;;  %v443_v6 = vsel %vm1534_vm14, 0.0, %v397_v63  ;;  %v447_v14 = vsel %vm1534_vm14, 0.0, %v401_v10  ;;  %v403_v16 = vld [vmem:[#allocation5 + $0x380] sm:$0xff] }
  0x6f   :  { %468 = vst [vmem:[#allocation8 + $0x310] sm:$0xff] %v435_v50  ;;  %v436_v45 = vsel %vm1551_vm15, 0.0, %v390_v47  ;;  %470 = vst [vmem:[#allocation8 + $0x320] sm:$0xff] %v437_v52  ;;  %v440_v60 = vsel %vm1551_vm15, 0.0, %v394_v57  ;;  %v444_v7 = vsel %vm1551_vm15, 0.0, %v398_v0  ;;  %v448_v15 = vsel %vm1551_vm15, 0.0, %v402_v11 }
  0x70   :  { %469 = vst [vmem:[#allocation8 + $0x318] sm:$0xff] %v436_v45  ;;  %471 = vst [vmem:[#allocation8 + $0x328] sm:$0xff] %v438_v38  ;;  %v404_v18 = vld [vmem:[#allocation5 + $0x388] sm:$0xff]  ;;  %v405_v13 = vld [vmem:[#allocation5 + $0x390] sm:$0xff]  ;;  %v449_v17 = vsel %vm1506_vm11, 0.0, %v403_v16  ;;  %vm543_vm8 = vcmp.lt.s32.totalorder %v1125_v4, %v1558_v55  ;;  %v1669_v59 = vstv %s1541_s16 }
  0x71   :  { %472 = vst [vmem:[#allocation8 + $0x330] sm:$0xff] %v439_v56  ;;  %473 = vst [vmem:[#allocation8 + $0x338] sm:$0xff] %v440_v60  ;;  %v450_v20 = vsel %vm1522_vm13, 0.0, %v404_v18  ;;  %v451_v24 = vsel %vm1534_vm14, 0.0, %v405_v13  ;;  %v406_v25 = vld [vmem:[#allocation5 + $0x398] sm:$0xff]  ;;  %v407_v27 = vld [vmem:[#allocation5 + $0x3a0] sm:$0xff]  ;;  %vm650_vm12 = vcmp.ge.s32.totalorder %v1116_v1, %v1669_v59 }
  0x72   :  { %474 = vst [vmem:[#allocation8 + $0x340] sm:$0xff] %v441_v61  ;;  %475 = vst [vmem:[#allocation8 + $0x348] sm:$0xff] %v442_v62  ;;  %v408_v28 = vld [vmem:[#allocation5 + $0x3a8] sm:$0xff]  ;;  %v452_v30 = vsel %vm1551_vm15, 0.0, %v406_v25  ;;  %v453_v31 = vsel %vm1506_vm11, 0.0, %v407_v27  ;;  %v409_v19 = vld [vmem:[#allocation5 + $0x3b0] sm:$0xff] }
  0x73   :  { %476 = vst [vmem:[#allocation8 + $0x350] sm:$0xff] %v443_v6  ;;  %477 = vst [vmem:[#allocation8 + $0x358] sm:$0xff] %v444_v7  ;;  %v454_v32 = vsel %vm1522_vm13, 0.0, %v408_v28  ;;  %v410_v23 = vld [vmem:[#allocation5 + $0x3b8] sm:$0xff]  ;;  %v411_v26 = vld [vmem:[#allocation5 + $0x3c0] sm:$0xff]  ;;  %v455_v35 = vsel %vm1534_vm14, 0.0, %v409_v19 }
  0x74   :  { %478 = vst [vmem:[#allocation8 + $0x360] sm:$0xff] %v445_v8  ;;  %479 = vst [vmem:[#allocation8 + $0x368] sm:$0xff] %v446_v12  ;;  %v456_v22 = vsel %vm1551_vm15, 0.0, %v410_v23  ;;  %v457_v36 = vsel %vm1506_vm11, 0.0, %v411_v26  ;;  %v412_v37 = vld [vmem:[#allocation5 + $0x3c8] sm:$0xff]  ;;  %v413_v40 = vld [vmem:[#allocation5 + $0x3d0] sm:$0xff] }
  0x75   :  { %480 = vst [vmem:[#allocation8 + $0x370] sm:$0xff] %v447_v14  ;;  %481 = vst [vmem:[#allocation8 + $0x378] sm:$0xff] %v448_v15  ;;  %v414_v42 = vld [vmem:[#allocation5 + $0x3d8] sm:$0xff]  ;;  %v458_v43 = vsel %vm1522_vm13, 0.0, %v412_v37  ;;  %v459_v33 = vsel %vm1534_vm14, 0.0, %v413_v40  ;;  %v415_v21 = vld [vmem:[#allocation5 + $0x3e0] sm:$0xff] }
  0x76   :  { %482 = vst [vmem:[#allocation8 + $0x380] sm:$0xff] %v449_v17  ;;  %483 = vst [vmem:[#allocation8 + $0x388] sm:$0xff] %v450_v20  ;;  %v460_v34 = vsel %vm1551_vm15, 0.0, %v414_v42  ;;  %v416_v29 = vld [vmem:[#allocation5 + $0x3e8] sm:$0xff]  ;;  %v417_v41 = vld [vmem:[#allocation5 + $0x3f0] sm:$0xff]  ;;  %v461_v47 = vsel %vm1506_vm11, 0.0, %v415_v21 }
  0x77   :  { %484 = vst [vmem:[#allocation8 + $0x390] sm:$0xff] %v451_v24  ;;  %485 = vst [vmem:[#allocation8 + $0x398] sm:$0xff] %v452_v30  ;;  %v462_v48 = vsel %vm1522_vm13, 0.0, %v416_v29  ;;  %v463_v50 = vsel %vm1534_vm14, 0.0, %v417_v41  ;;  %v418_v52 = vld [vmem:[#allocation5 + $0x3f8] sm:$0xff]  ;;  %v502_v53 = vld [vmem:[#allocation5 + $0x400] sm:$0xff]  ;;  %vm655_vm13 = vcmp.lt.s32.totalorder %v1116_v1, %v1688_v5  ;;  %vm651_vm14 = vcmp.ge.s32.totalorder %v1119_v2, %v1669_v59 }
  0x78   :  { %486 = vst [vmem:[#allocation8 + $0x3a0] sm:$0xff] %v453_v31  ;;  %487 = vst [vmem:[#allocation8 + $0x3a8] sm:$0xff] %v454_v32  ;;  %v464_v44 = vsel %vm1551_vm15, 0.0, %v418_v52  ;;  %v503_v46 = vld [vmem:[#allocation5 + $0x408] sm:$0xff]  ;;  %v504_v38 = vld [vmem:[#allocation5 + $0x410] sm:$0xff]  ;;  %vm656_vm15 = vcmp.lt.s32.totalorder %v1119_v2, %v1688_v5 }
  0x79   :  { %488 = vst [vmem:[#allocation8 + $0x3b0] sm:$0xff] %v455_v35  ;;  %489 = vst [vmem:[#allocation8 + $0x3b8] sm:$0xff] %v456_v22  ;;  %v505_v57 = vld [vmem:[#allocation5 + $0x418] sm:$0xff]  ;;  %v506_v58 = vld [vmem:[#allocation5 + $0x420] sm:$0xff] }
  0x7a   :  { %490 = vst [vmem:[#allocation8 + $0x3c0] sm:$0xff] %v457_v36  ;;  %491 = vst [vmem:[#allocation8 + $0x3c8] sm:$0xff] %v458_v43  ;;  %v507_v63 = vld [vmem:[#allocation5 + $0x428] sm:$0xff]  ;;  %v508_v0 = vld [vmem:[#allocation5 + $0x430] sm:$0xff] }
  0x7b   :  { %492 = vst [vmem:[#allocation8 + $0x3d0] sm:$0xff] %v459_v33  ;;  %493 = vst [vmem:[#allocation8 + $0x3d8] sm:$0xff] %v460_v34  ;;  %v509_v7 = vld [vmem:[#allocation5 + $0x438] sm:$0xff]  ;;  %v510_v8 = vld [vmem:[#allocation5 + $0x440] sm:$0xff] }
  0x7c   :  { %vm1636_vm7 = vmand %vm535_vm0, %vm540_vm1  ;;  %494 = vst [vmem:[#allocation8 + $0x3e0] sm:$0xff] %v461_v47  ;;  %v511_v9 = vld [vmem:[#allocation5 + $0x448] sm:$0xff]  ;;  %v512_v14 = vld [vmem:[#allocation5 + $0x450] sm:$0xff]  ;;  %vm652_vm0 = vcmp.ge.s32.totalorder %v1122_v3, %v1669_v59  ;;  %vm657_vm1 = vcmp.lt.s32.totalorder %v1122_v3, %v1688_v5 }
  0x7d   :  { %495 = vst [vmem:[#allocation8 + $0x3e8] sm:$0xff] %v462_v48  ;;  %496 = vst [vmem:[#allocation8 + $0x3f0] sm:$0xff] %v463_v50  ;;  %v548_v39 = vsel %vm1636_vm7, 0.0, %v502_v53  ;;  %v552_v62 = vsel %vm1636_vm7, 0.0, %v506_v58  ;;  %v556_v11 = vsel %vm1636_vm7, 0.0, %v510_v8  ;;  %v513_v15 = vld [vmem:[#allocation5 + $0x458] sm:$0xff] }
  0x7e   :  { %vm1652_vm9 = vmand %vm536_vm2, %vm541_vm3  ;;  %497 = vst [vmem:[#allocation8 + $0x3f8] sm:$0xff] %v464_v44  ;;  %v514_v16 = vld [vmem:[#allocation5 + $0x460] sm:$0xff]  ;;  %v515_v20 = vld [vmem:[#allocation5 + $0x468] sm:$0xff]  ;;  %vm653_vm2 = vcmp.ge.s32.totalorder %v1125_v4, %v1669_v59 }
  0x7f   :  { %581 = vst [vmem:[#allocation8 + $0x400] sm:$0xff] %v548_v39  ;;  %v549_v51 = vsel %vm1652_vm9, 0.0, %v503_v46  ;;  %vm1664_vm10 = vmand %vm537_vm4, %vm542_vm5  ;;  %v553_v49 = vsel %vm1652_vm9, 0.0, %v507_v63  ;;  %v557_v12 = vsel %vm1652_vm9, 0.0, %v511_v9  ;;  %v560_v17 = vsel %vm1636_vm7, 0.0, %v514_v16  ;;  %v516_v24 = vld [vmem:[#allocation5 + $0x470] sm:$0xff] }
  0x80   :  { %582 = vst [vmem:[#allocation8 + $0x408] sm:$0xff] %v549_v51  ;;  %v550_v60 = vsel %vm1664_vm10, 0.0, %v504_v38  ;;  %vm1681_vm11 = vmand %vm538_vm6, %vm543_vm8  ;;  %v554_v6 = vsel %vm1664_vm10, 0.0, %v508_v0  ;;  %v558_v18 = vsel %vm1664_vm10, 0.0, %v512_v14  ;;  %v517_v25 = vld [vmem:[#allocation5 + $0x478] sm:$0xff]  ;;  %v561_v27 = vsel %vm1652_vm9, 0.0, %v515_v20 }
  0x81   :  { %583 = vst [vmem:[#allocation8 + $0x410] sm:$0xff] %v550_v60  ;;  %v551_v55 = vsel %vm1681_vm11, 0.0, %v505_v57  ;;  %585 = vst [vmem:[#allocation8 + $0x420] sm:$0xff] %v552_v62  ;;  %v555_v10 = vsel %vm1681_vm11, 0.0, %v509_v7  ;;  %v559_v13 = vsel %vm1681_vm11, 0.0, %v513_v15  ;;  %v562_v28 = vsel %vm1664_vm10, 0.0, %v516_v24 }
  0x82   :  { %584 = vst [vmem:[#allocation8 + $0x418] sm:$0xff] %v551_v55  ;;  %586 = vst [vmem:[#allocation8 + $0x428] sm:$0xff] %v553_v49  ;;  %v563_v30 = vsel %vm1681_vm11, 0.0, %v517_v25  ;;  %v518_v31 = vld [vmem:[#allocation5 + $0x480] sm:$0xff]  ;;  %v519_v32 = vld [vmem:[#allocation5 + $0x488] sm:$0xff]  ;;  %vm658_vm4 = vcmp.lt.s32.totalorder %v1125_v4, %v1688_v5  ;;  %v1799_v9 = vstv %s1671_s18  ;;  %v1818_v16 = vstv %s1690_s19 }
  0x83   :  { %587 = vst [vmem:[#allocation8 + $0x430] sm:$0xff] %v554_v6  ;;  %588 = vst [vmem:[#allocation8 + $0x438] sm:$0xff] %v555_v10  ;;  %v520_v19 = vld [vmem:[#allocation5 + $0x490] sm:$0xff]  ;;  %v564_v23 = vsel %vm1636_vm7, 0.0, %v518_v31  ;;  %v565_v26 = vsel %vm1652_vm9, 0.0, %v519_v32  ;;  %v521_v22 = vld [vmem:[#allocation5 + $0x498] sm:$0xff]  ;;  %vm765_vm8 = vcmp.ge.s32.totalorder %v1116_v1, %v1799_v9 }
  0x84   :  { %589 = vst [vmem:[#allocation8 + $0x440] sm:$0xff] %v556_v11  ;;  %590 = vst [vmem:[#allocation8 + $0x448] sm:$0xff] %v557_v12  ;;  %v566_v35 = vsel %vm1664_vm10, 0.0, %v520_v19  ;;  %v522_v36 = vld [vmem:[#allocation5 + $0x4a0] sm:$0xff]  ;;  %v523_v37 = vld [vmem:[#allocation5 + $0x4a8] sm:$0xff]  ;;  %v567_v40 = vsel %vm1681_vm11, 0.0, %v521_v22 }
  0x85   :  { %591 = vst [vmem:[#allocation8 + $0x450] sm:$0xff] %v558_v18  ;;  %592 = vst [vmem:[#allocation8 + $0x458] sm:$0xff] %v559_v13  ;;  %v568_v42 = vsel %vm1636_vm7, 0.0, %v522_v36  ;;  %v569_v43 = vsel %vm1652_vm9, 0.0, %v523_v37  ;;  %v524_v33 = vld [vmem:[#allocation5 + $0x4b0] sm:$0xff]  ;;  %v525_v34 = vld [vmem:[#allocation5 + $0x4b8] sm:$0xff] }
  0x86   :  { %593 = vst [vmem:[#allocation8 + $0x460] sm:$0xff] %v560_v17  ;;  %594 = vst [vmem:[#allocation8 + $0x468] sm:$0xff] %v561_v27  ;;  %v526_v21 = vld [vmem:[#allocation5 + $0x4c0] sm:$0xff]  ;;  %v570_v29 = vsel %vm1664_vm10, 0.0, %v524_v33  ;;  %v571_v41 = vsel %vm1681_vm11, 0.0, %v525_v34  ;;  %v527_v48 = vld [vmem:[#allocation5 + $0x4c8] sm:$0xff] }
  0x87   :  { %595 = vst [vmem:[#allocation8 + $0x470] sm:$0xff] %v562_v28  ;;  %596 = vst [vmem:[#allocation8 + $0x478] sm:$0xff] %v563_v30  ;;  %v572_v47 = vsel %vm1636_vm7, 0.0, %v526_v21  ;;  %v528_v50 = vld [vmem:[#allocation5 + $0x4d0] sm:$0xff]  ;;  %v529_v52 = vld [vmem:[#allocation5 + $0x4d8] sm:$0xff]  ;;  %v573_v53 = vsel %vm1652_vm9, 0.0, %v527_v48 }
  0x88   :  { %597 = vst [vmem:[#allocation8 + $0x480] sm:$0xff] %v564_v23  ;;  %598 = vst [vmem:[#allocation8 + $0x488] sm:$0xff] %v565_v26  ;;  %v574_v44 = vsel %vm1664_vm10, 0.0, %v528_v50  ;;  %v575_v39 = vsel %vm1681_vm11, 0.0, %v529_v52  ;;  %v530_v46 = vld [vmem:[#allocation5 + $0x4e0] sm:$0xff]  ;;  %v531_v38 = vld [vmem:[#allocation5 + $0x4e8] sm:$0xff] }
  0x89   :  { %599 = vst [vmem:[#allocation8 + $0x490] sm:$0xff] %v566_v35  ;;  %600 = vst [vmem:[#allocation8 + $0x498] sm:$0xff] %v567_v40  ;;  %v532_v51 = vld [vmem:[#allocation5 + $0x4f0] sm:$0xff]  ;;  %v576_v57 = vsel %vm1636_vm7, 0.0, %v530_v46  ;;  %v577_v58 = vsel %vm1652_vm9, 0.0, %v531_v38  ;;  %v533_v62 = vld [vmem:[#allocation5 + $0x4f8] sm:$0xff]  ;;  %vm770_vm9 = vcmp.lt.s32.totalorder %v1116_v1, %v1818_v16 }
  0x8a   :  { %601 = vst [vmem:[#allocation8 + $0x4a0] sm:$0xff] %v568_v42  ;;  %602 = vst [vmem:[#allocation8 + $0x4a8] sm:$0xff] %v569_v43  ;;  %v578_v60 = vsel %vm1664_vm10, 0.0, %v532_v51  ;;  %v617_v63 = vld [vmem:[#allocation5 + $0x500] sm:$0xff]  ;;  %v579_v54 = vsel %vm1681_vm11, 0.0, %v533_v62  ;;  %v618_v56 = vld [vmem:[#allocation5 + $0x508] sm:$0xff]  ;;  %vm766_vm10 = vcmp.ge.s32.totalorder %v1119_v2, %v1799_v9  ;;  %vm771_vm11 = vcmp.lt.s32.totalorder %v1119_v2, %v1818_v16 }
  0x8b   :  { %603 = vst [vmem:[#allocation8 + $0x4b0] sm:$0xff] %v570_v29  ;;  %604 = vst [vmem:[#allocation8 + $0x4b8] sm:$0xff] %v571_v41  ;;  %v619_v49 = vld [vmem:[#allocation5 + $0x510] sm:$0xff]  ;;  %v620_v7 = vld [vmem:[#allocation5 + $0x518] sm:$0xff] }
  0x8c   :  { %605 = vst [vmem:[#allocation8 + $0x4c0] sm:$0xff] %v572_v47  ;;  %606 = vst [vmem:[#allocation8 + $0x4c8] sm:$0xff] %v573_v53  ;;  %v621_v8 = vld [vmem:[#allocation5 + $0x520] sm:$0xff]  ;;  %v622_v14 = vld [vmem:[#allocation5 + $0x528] sm:$0xff] }
  0x8d   :  { %607 = vst [vmem:[#allocation8 + $0x4d0] sm:$0xff] %v574_v44  ;;  %608 = vst [vmem:[#allocation8 + $0x4d8] sm:$0xff] %v575_v39  ;;  %v623_v15 = vld [vmem:[#allocation5 + $0x530] sm:$0xff]  ;;  %v624_v13 = vld [vmem:[#allocation5 + $0x538] sm:$0xff] }
  0x8e   :  { %vm1766_vm3 = vmand %vm650_vm12, %vm655_vm13  ;;  %609 = vst [vmem:[#allocation8 + $0x4e0] sm:$0xff] %v576_v57  ;;  %v625_v17 = vld [vmem:[#allocation5 + $0x540] sm:$0xff]  ;;  %v626_v20 = vld [vmem:[#allocation5 + $0x548] sm:$0xff]  ;;  %vm767_vm12 = vcmp.ge.s32.totalorder %v1122_v3, %v1799_v9  ;;  %vm772_vm13 = vcmp.lt.s32.totalorder %v1122_v3, %v1818_v16 }
  0x8f   :  { %610 = vst [vmem:[#allocation8 + $0x4e8] sm:$0xff] %v577_v58  ;;  %611 = vst [vmem:[#allocation8 + $0x4f0] sm:$0xff] %v578_v60  ;;  %v663_v45 = vsel %vm1766_vm3, 0.0, %v617_v63  ;;  %v667_v12 = vsel %vm1766_vm3, 0.0, %v621_v8  ;;  %v671_v25 = vsel %vm1766_vm3, 0.0, %v625_v17  ;;  %v627_v28 = vld [vmem:[#allocation5 + $0x550] sm:$0xff] }
  0x90   :  { %vm1782_vm5 = vmand %vm651_vm14, %vm656_vm15  ;;  %612 = vst [vmem:[#allocation8 + $0x4f8] sm:$0xff] %v579_v54  ;;  %v628_v30 = vld [vmem:[#allocation5 + $0x558] sm:$0xff]  ;;  %v629_v31 = vld [vmem:[#allocation5 + $0x560] sm:$0xff]  ;;  %vm768_vm14 = vcmp.ge.s32.totalorder %v1125_v4, %v1799_v9 }
  0x91   :  { %696 = vst [vmem:[#allocation8 + $0x500] sm:$0xff] %v663_v45  ;;  %v664_v61 = vsel %vm1782_vm5, 0.0, %v618_v56  ;;  %vm1794_vm6 = vmand %vm652_vm0, %vm657_vm1  ;;  %v668_v59 = vsel %vm1782_vm5, 0.0, %v622_v14  ;;  %v672_v27 = vsel %vm1782_vm5, 0.0, %v626_v20  ;;  %v675_v23 = vsel %vm1766_vm3, 0.0, %v629_v31  ;;  %v630_v26 = vld [vmem:[#allocation5 + $0x568] sm:$0xff] }
  0x92   :  { %697 = vst [vmem:[#allocation8 + $0x508] sm:$0xff] %v664_v61  ;;  %v665_v10 = vsel %vm1794_vm6, 0.0, %v619_v49  ;;  %vm1811_vm7 = vmand %vm653_vm2, %vm658_vm4  ;;  %v669_v18 = vsel %vm1794_vm6, 0.0, %v623_v15  ;;  %v673_v32 = vsel %vm1794_vm6, 0.0, %v627_v28  ;;  %v631_v35 = vld [vmem:[#allocation5 + $0x570] sm:$0xff]  ;;  %v632_v22 = vld [vmem:[#allocation5 + $0x578] sm:$0xff]  ;;  %vm773_vm0 = vcmp.lt.s32.totalorder %v1125_v4, %v1818_v16 }
  0x93   :  { %698 = vst [vmem:[#allocation8 + $0x510] sm:$0xff] %v665_v10  ;;  %v666_v5 = vsel %vm1811_vm7, 0.0, %v620_v7  ;;  %700 = vst [vmem:[#allocation8 + $0x520] sm:$0xff] %v667_v12  ;;  %v670_v24 = vsel %vm1811_vm7, 0.0, %v624_v13  ;;  %v674_v19 = vsel %vm1811_vm7, 0.0, %v628_v30  ;;  %v676_v36 = vsel %vm1782_vm5, 0.0, %v630_v26 }
  0x94   :  { %699 = vst [vmem:[#allocation8 + $0x518] sm:$0xff] %v666_v5  ;;  %701 = vst [vmem:[#allocation8 + $0x528] sm:$0xff] %v668_v59  ;;  %v677_v37 = vsel %vm1794_vm6, 0.0, %v631_v35  ;;  %v678_v40 = vsel %vm1811_vm7, 0.0, %v632_v22  ;;  %v633_v42 = vld [vmem:[#allocation5 + $0x580] sm:$0xff]  ;;  %v634_v43 = vld [vmem:[#allocation5 + $0x588] sm:$0xff]  ;;  %v1929_v20 = vstv %s1801_s20  ;;  %v1946_v31 = vstv %s1820_s0 }
  0x95   :  { %702 = vst [vmem:[#allocation8 + $0x530] sm:$0xff] %v669_v18  ;;  %703 = vst [vmem:[#allocation8 + $0x538] sm:$0xff] %v670_v24  ;;  %v635_v33 = vld [vmem:[#allocation5 + $0x590] sm:$0xff]  ;;  %v679_v34 = vsel %vm1766_vm3, 0.0, %v633_v42  ;;  %v680_v21 = vsel %vm1782_vm5, 0.0, %v634_v43  ;;  %v636_v41 = vld [vmem:[#allocation5 + $0x598] sm:$0xff]  ;;  %vm880_vm4 = vcmp.ge.s32.totalorder %v1116_v1, %v1929_v20 }
  0x96   :  { %704 = vst [vmem:[#allocation8 + $0x540] sm:$0xff] %v671_v25  ;;  %705 = vst [vmem:[#allocation8 + $0x548] sm:$0xff] %v672_v27  ;;  %v681_v29 = vsel %vm1794_vm6, 0.0, %v635_v33  ;;  %v637_v47 = vld [vmem:[#allocation5 + $0x5a0] sm:$0xff]  ;;  %v638_v48 = vld [vmem:[#allocation5 + $0x5a8] sm:$0xff]  ;;  %v682_v50 = vsel %vm1811_vm7, 0.0, %v636_v41 }
  0x97   :  { %706 = vst [vmem:[#allocation8 + $0x550] sm:$0xff] %v673_v32  ;;  %707 = vst [vmem:[#allocation8 + $0x558] sm:$0xff] %v674_v19  ;;  %v683_v52 = vsel %vm1766_vm3, 0.0, %v637_v47  ;;  %v684_v53 = vsel %vm1782_vm5, 0.0, %v638_v48  ;;  %v639_v44 = vld [vmem:[#allocation5 + $0x5b0] sm:$0xff]  ;;  %v640_v39 = vld [vmem:[#allocation5 + $0x5b8] sm:$0xff] }
  0x98   :  { %708 = vst [vmem:[#allocation8 + $0x560] sm:$0xff] %v675_v23  ;;  %709 = vst [vmem:[#allocation8 + $0x568] sm:$0xff] %v676_v36  ;;  %v641_v46 = vld [vmem:[#allocation5 + $0x5c0] sm:$0xff]  ;;  %v685_v38 = vsel %vm1794_vm6, 0.0, %v639_v44  ;;  %v686_v51 = vsel %vm1811_vm7, 0.0, %v640_v39  ;;  %v642_v58 = vld [vmem:[#allocation5 + $0x5c8] sm:$0xff] }
  0x99   :  { %710 = vst [vmem:[#allocation8 + $0x570] sm:$0xff] %v677_v37  ;;  %711 = vst [vmem:[#allocation8 + $0x578] sm:$0xff] %v678_v40  ;;  %v687_v57 = vsel %vm1766_vm3, 0.0, %v641_v46  ;;  %v643_v60 = vld [vmem:[#allocation5 + $0x5d0] sm:$0xff]  ;;  %v644_v62 = vld [vmem:[#allocation5 + $0x5d8] sm:$0xff]  ;;  %v688_v63 = vsel %vm1782_vm5, 0.0, %v642_v58 }
  0x9a   :  { %712 = vst [vmem:[#allocation8 + $0x580] sm:$0xff] %v679_v34  ;;  %713 = vst [vmem:[#allocation8 + $0x588] sm:$0xff] %v680_v21  ;;  %v689_v54 = vsel %vm1794_vm6, 0.0, %v643_v60  ;;  %v690_v45 = vsel %vm1811_vm7, 0.0, %v644_v62  ;;  %v645_v56 = vld [vmem:[#allocation5 + $0x5e0] sm:$0xff]  ;;  %v646_v49 = vld [vmem:[#allocation5 + $0x5e8] sm:$0xff] }
  0x9b   :  { %714 = vst [vmem:[#allocation8 + $0x590] sm:$0xff] %v681_v29  ;;  %715 = vst [vmem:[#allocation8 + $0x598] sm:$0xff] %v682_v50  ;;  %v647_v61 = vld [vmem:[#allocation5 + $0x5f0] sm:$0xff]  ;;  %v691_v7 = vsel %vm1766_vm3, 0.0, %v645_v56  ;;  %v692_v8 = vsel %vm1782_vm5, 0.0, %v646_v49  ;;  %v648_v12 = vld [vmem:[#allocation5 + $0x5f8] sm:$0xff]  ;;  %vm885_vm5 = vcmp.lt.s32.totalorder %v1116_v1, %v1946_v31 }
  0x9c   :  { %716 = vst [vmem:[#allocation8 + $0x5a0] sm:$0xff] %v683_v52  ;;  %717 = vst [vmem:[#allocation8 + $0x5a8] sm:$0xff] %v684_v53  ;;  %v693_v10 = vsel %vm1794_vm6, 0.0, %v647_v61  ;;  %v732_v14 = vld [vmem:[#allocation5 + $0x600] sm:$0xff]  ;;  %v694_v0 = vsel %vm1811_vm7, 0.0, %v648_v12  ;;  %v733_v6 = vld [vmem:[#allocation5 + $0x608] sm:$0xff]  ;;  %vm881_vm6 = vcmp.ge.s32.totalorder %v1119_v2, %v1929_v20  ;;  %vm886_vm7 = vcmp.lt.s32.totalorder %v1119_v2, %v1946_v31 }
  0x9d   :  { %718 = vst [vmem:[#allocation8 + $0x5b0] sm:$0xff] %v685_v38  ;;  %719 = vst [vmem:[#allocation8 + $0x5b8] sm:$0xff] %v686_v51  ;;  %v734_v59 = vld [vmem:[#allocation5 + $0x610] sm:$0xff]  ;;  %v735_v13 = vld [vmem:[#allocation5 + $0x618] sm:$0xff] }
  0x9e   :  { %720 = vst [vmem:[#allocation8 + $0x5c0] sm:$0xff] %v687_v57  ;;  %721 = vst [vmem:[#allocation8 + $0x5c8] sm:$0xff] %v688_v63  ;;  %v736_v17 = vld [vmem:[#allocation5 + $0x620] sm:$0xff]  ;;  %v737_v28 = vld [vmem:[#allocation5 + $0x628] sm:$0xff] }
  0x9f   :  { %722 = vst [vmem:[#allocation8 + $0x5d0] sm:$0xff] %v689_v54  ;;  %723 = vst [vmem:[#allocation8 + $0x5d8] sm:$0xff] %v690_v45  ;;  %v738_v30 = vld [vmem:[#allocation5 + $0x630] sm:$0xff]  ;;  %v739_v19 = vld [vmem:[#allocation5 + $0x638] sm:$0xff] }
  0xa0   :  { %vm1896_vm15 = vmand %vm765_vm8, %vm770_vm9  ;;  %724 = vst [vmem:[#allocation8 + $0x5e0] sm:$0xff] %v691_v7  ;;  %v740_v23 = vld [vmem:[#allocation5 + $0x640] sm:$0xff]  ;;  %v741_v26 = vld [vmem:[#allocation5 + $0x648] sm:$0xff]  ;;  %vm882_vm8 = vcmp.ge.s32.totalorder %v1122_v3, %v1929_v20  ;;  %vm887_vm9 = vcmp.lt.s32.totalorder %v1122_v3, %v1946_v31 }
  0xa1   :  { %725 = vst [vmem:[#allocation8 + $0x5e8] sm:$0xff] %v692_v8  ;;  %726 = vst [vmem:[#allocation8 + $0x5f0] sm:$0xff] %v693_v10  ;;  %v778_v55 = vsel %vm1896_vm15, 0.0, %v732_v14  ;;  %v782_v27 = vsel %vm1896_vm15, 0.0, %v736_v17  ;;  %v786_v22 = vsel %vm1896_vm15, 0.0, %v740_v23  ;;  %v742_v37 = vld [vmem:[#allocation5 + $0x650] sm:$0xff] }
  0xa2   :  { %vm1912_vm1 = vmand %vm766_vm10, %vm771_vm11  ;;  %727 = vst [vmem:[#allocation8 + $0x5f8] sm:$0xff] %v694_v0  ;;  %v743_v40 = vld [vmem:[#allocation5 + $0x658] sm:$0xff]  ;;  %v744_v42 = vld [vmem:[#allocation5 + $0x660] sm:$0xff]  ;;  %vm883_vm10 = vcmp.ge.s32.totalorder %v1125_v4, %v1929_v20 }
  0xa3   :  { %811 = vst [vmem:[#allocation8 + $0x600] sm:$0xff] %v778_v55  ;;  %v779_v11 = vsel %vm1912_vm1, 0.0, %v733_v6  ;;  %vm1924_vm2 = vmand %vm767_vm12, %vm772_vm13  ;;  %v783_v16 = vsel %vm1912_vm1, 0.0, %v737_v28  ;;  %v787_v36 = vsel %vm1912_vm1, 0.0, %v741_v26  ;;  %v790_v34 = vsel %vm1896_vm15, 0.0, %v744_v42  ;;  %v745_v21 = vld [vmem:[#allocation5 + $0x668] sm:$0xff] }
  0xa4   :  { %812 = vst [vmem:[#allocation8 + $0x608] sm:$0xff] %v779_v11  ;;  %v780_v24 = vsel %vm1924_vm2, 0.0, %v734_v59  ;;  %vm1939_vm3 = vmand %vm768_vm14, %vm773_vm0  ;;  %v784_v9 = vsel %vm1924_vm2, 0.0, %v738_v30  ;;  %v788_v43 = vsel %vm1924_vm2, 0.0, %v742_v37  ;;  %v746_v29 = vld [vmem:[#allocation5 + $0x670] sm:$0xff]  ;;  %v747_v41 = vld [vmem:[#allocation5 + $0x678] sm:$0xff]  ;;  %vm888_vm12 = vcmp.lt.s32.totalorder %v1125_v4, %v1946_v31 }
  0xa5   :  { %813 = vst [vmem:[#allocation8 + $0x610] sm:$0xff] %v780_v24  ;;  %v781_v32 = vsel %vm1939_vm3, 0.0, %v735_v13  ;;  %815 = vst [vmem:[#allocation8 + $0x620] sm:$0xff] %v782_v27  ;;  %v785_v35 = vsel %vm1939_vm3, 0.0, %v739_v19  ;;  %v789_v33 = vsel %vm1939_vm3, 0.0, %v743_v40  ;;  %v791_v47 = vsel %vm1912_vm1, 0.0, %v745_v21 }
  0xa6   :  { %814 = vst [vmem:[#allocation8 + $0x618] sm:$0xff] %v781_v32  ;;  %816 = vst [vmem:[#allocation8 + $0x628] sm:$0xff] %v783_v16  ;;  %v792_v48 = vsel %vm1924_vm2, 0.0, %v746_v29  ;;  %v793_v50 = vsel %vm1939_vm3, 0.0, %v747_v41  ;;  %v748_v52 = vld [vmem:[#allocation5 + $0x680] sm:$0xff]  ;;  %v749_v53 = vld [vmem:[#allocation5 + $0x688] sm:$0xff] }
  0xa7   :  { %817 = vst [vmem:[#allocation8 + $0x630] sm:$0xff] %v784_v9  ;;  %818 = vst [vmem:[#allocation8 + $0x638] sm:$0xff] %v785_v35  ;;  %v750_v44 = vld [vmem:[#allocation5 + $0x690] sm:$0xff]  ;;  %v794_v39 = vsel %vm1896_vm15, 0.0, %v748_v52  ;;  %v795_v46 = vsel %vm1912_vm1, 0.0, %v749_v53  ;;  %v751_v51 = vld [vmem:[#allocation5 + $0x698] sm:$0xff] }
  0xa8   :  { %819 = vst [vmem:[#allocation8 + $0x640] sm:$0xff] %v786_v22  ;;  %820 = vst [vmem:[#allocation8 + $0x648] sm:$0xff] %v787_v36  ;;  %v796_v38 = vsel %vm1924_vm2, 0.0, %v750_v44  ;;  %v752_v57 = vld [vmem:[#allocation5 + $0x6a0] sm:$0xff]  ;;  %v753_v58 = vld [vmem:[#allocation5 + $0x6a8] sm:$0xff]  ;;  %v797_v60 = vsel %vm1939_vm3, 0.0, %v751_v51 }
  0xa9   :  { %821 = vst [vmem:[#allocation8 + $0x650] sm:$0xff] %v788_v43  ;;  %822 = vst [vmem:[#allocation8 + $0x658] sm:$0xff] %v789_v33  ;;  %v798_v62 = vsel %vm1896_vm15, 0.0, %v752_v57  ;;  %v799_v63 = vsel %vm1912_vm1, 0.0, %v753_v58  ;;  %v754_v54 = vld [vmem:[#allocation5 + $0x6b0] sm:$0xff]  ;;  %v755_v45 = vld [vmem:[#allocation5 + $0x6b8] sm:$0xff] }
  0xaa   :  { %823 = vst [vmem:[#allocation8 + $0x660] sm:$0xff] %v790_v34  ;;  %824 = vst [vmem:[#allocation8 + $0x668] sm:$0xff] %v791_v47  ;;  %v756_v56 = vld [vmem:[#allocation5 + $0x6c0] sm:$0xff]  ;;  %v800_v49 = vsel %vm1924_vm2, 0.0, %v754_v54  ;;  %v801_v61 = vsel %vm1939_vm3, 0.0, %v755_v45  ;;  %v757_v8 = vld [vmem:[#allocation5 + $0x6c8] sm:$0xff] }
  0xab   :  { %825 = vst [vmem:[#allocation8 + $0x670] sm:$0xff] %v792_v48  ;;  %826 = vst [vmem:[#allocation8 + $0x678] sm:$0xff] %v793_v50  ;;  %v802_v7 = vsel %vm1896_vm15, 0.0, %v756_v56  ;;  %v758_v10 = vld [vmem:[#allocation5 + $0x6d0] sm:$0xff]  ;;  %v759_v12 = vld [vmem:[#allocation5 + $0x6d8] sm:$0xff]  ;;  %v803_v14 = vsel %vm1912_vm1, 0.0, %v757_v8 }
  0xac   :  { %827 = vst [vmem:[#allocation8 + $0x680] sm:$0xff] %v794_v39  ;;  %828 = vst [vmem:[#allocation8 + $0x688] sm:$0xff] %v795_v46  ;;  %v804_v0 = vsel %vm1924_vm2, 0.0, %v758_v10  ;;  %v805_v55 = vsel %vm1939_vm3, 0.0, %v759_v12  ;;  %v760_v6 = vld [vmem:[#allocation5 + $0x6e0] sm:$0xff]  ;;  %v761_v59 = vld [vmem:[#allocation5 + $0x6e8] sm:$0xff] }
  0xad   :  { %829 = vst [vmem:[#allocation8 + $0x690] sm:$0xff] %v796_v38  ;;  %830 = vst [vmem:[#allocation8 + $0x698] sm:$0xff] %v797_v60  ;;  %v762_v11 = vld [vmem:[#allocation5 + $0x6f0] sm:$0xff]  ;;  %v806_v13 = vsel %vm1896_vm15, 0.0, %v760_v6  ;;  %v807_v17 = vsel %vm1912_vm1, 0.0, %v761_v59  ;;  %v763_v27 = vld [vmem:[#allocation5 + $0x6f8] sm:$0xff] }
  0xae   :  { %831 = vst [vmem:[#allocation8 + $0x6a0] sm:$0xff] %v798_v62  ;;  %832 = vst [vmem:[#allocation8 + $0x6a8] sm:$0xff] %v799_v63  ;;  %v808_v24 = vsel %vm1924_vm2, 0.0, %v762_v11  ;;  %v847_v28 = vld [vmem:[#allocation5 + $0x700] sm:$0xff]  ;;  %v809_v15 = vsel %vm1939_vm3, 0.0, %v763_v27  ;;  %v848_v18 = vld [vmem:[#allocation5 + $0x708] sm:$0xff] }
  0xaf   :  { %833 = vst [vmem:[#allocation8 + $0x6b0] sm:$0xff] %v800_v49  ;;  %834 = vst [vmem:[#allocation8 + $0x6b8] sm:$0xff] %v801_v61  ;;  %v849_v32 = vld [vmem:[#allocation5 + $0x710] sm:$0xff]  ;;  %v850_v2 = vld [vmem:[#allocation5 + $0x718] sm:$0xff] }
  0xb0   :  { %835 = vst [vmem:[#allocation8 + $0x6c0] sm:$0xff] %v802_v7  ;;  %836 = vst [vmem:[#allocation8 + $0x6c8] sm:$0xff] %v803_v14  ;;  %v851_v9 = vld [vmem:[#allocation5 + $0x720] sm:$0xff]  ;;  %v852_v26 = vld [vmem:[#allocation5 + $0x728] sm:$0xff] }
  0xb1   :  { %837 = vst [vmem:[#allocation8 + $0x6d0] sm:$0xff] %v804_v0  ;;  %838 = vst [vmem:[#allocation8 + $0x6d8] sm:$0xff] %v805_v55  ;;  %v853_v35 = vld [vmem:[#allocation5 + $0x730] sm:$0xff]  ;;  %v854_v31 = vld [vmem:[#allocation5 + $0x738] sm:$0xff] }
  0xb2   :  { %vm2022_vm11 = vmand %vm880_vm4, %vm885_vm5  ;;  %839 = vst [vmem:[#allocation8 + $0x6e0] sm:$0xff] %v806_v13  ;;  %v855_v36 = vld [vmem:[#allocation5 + $0x740] sm:$0xff]  ;;  %v856_v37 = vld [vmem:[#allocation5 + $0x748] sm:$0xff] }
  0xb3   :  { %840 = vst [vmem:[#allocation8 + $0x6e8] sm:$0xff] %v807_v17  ;;  %841 = vst [vmem:[#allocation8 + $0x6f0] sm:$0xff] %v808_v24  ;;  %v893_v5 = vsel %vm2022_vm11, 0.0, %v847_v28  ;;  %v897_v3 = vsel %vm2022_vm11, 0.0, %v851_v9  ;;  %v901_v42 = vsel %vm2022_vm11, 0.0, %v855_v36  ;;  %v857_v33 = vld [vmem:[#allocation5 + $0x750] sm:$0xff] }
  0xb4   :  { %vm2038_vm13 = vmand %vm881_vm6, %vm886_vm7  ;;  %842 = vst [vmem:[#allocation8 + $0x6f8] sm:$0xff] %v809_v15  ;;  %v858_v34 = vld [vmem:[#allocation5 + $0x758] sm:$0xff]  ;;  %v859_v21 = vld [vmem:[#allocation5 + $0x760] sm:$0xff] }
  0xb5   :  { %926 = vst [vmem:[#allocation8 + $0x700] sm:$0xff] %v893_v5  ;;  %v894_v25 = vsel %vm2038_vm13, 0.0, %v848_v18  ;;  %vm2050_vm14 = vmand %vm882_vm8, %vm887_vm9  ;;  %v898_v4 = vsel %vm2038_vm13, 0.0, %v852_v26  ;;  %v902_v43 = vsel %vm2038_vm13, 0.0, %v856_v37  ;;  %v905_v47 = vsel %vm2022_vm11, 0.0, %v859_v21  ;;  %v860_v48 = vld [vmem:[#allocation5 + $0x768] sm:$0xff] }
  0xb6   :  { %927 = vst [vmem:[#allocation8 + $0x708] sm:$0xff] %v894_v25  ;;  %v895_v19 = vsel %vm2050_vm14, 0.0, %v849_v32  ;;  %vm2062_vm15 = vmand %vm883_vm10, %vm888_vm12  ;;  %v899_v20 = vsel %vm2050_vm14, 0.0, %v853_v35  ;;  %v903_v29 = vsel %vm2050_vm14, 0.0, %v857_v33  ;;  %v861_v50 = vld [vmem:[#allocation5 + $0x770] sm:$0xff]  ;;  %v862_v52 = vld [vmem:[#allocation5 + $0x778] sm:$0xff] }
  0xb7   :  { %928 = vst [vmem:[#allocation8 + $0x710] sm:$0xff] %v895_v19  ;;  %v896_v22 = vsel %vm2062_vm15, 0.0, %v850_v2  ;;  %930 = vst [vmem:[#allocation8 + $0x720] sm:$0xff] %v897_v3  ;;  %v900_v40 = vsel %vm2062_vm15, 0.0, %v854_v31  ;;  %v904_v41 = vsel %vm2062_vm15, 0.0, %v858_v34  ;;  %v906_v53 = vsel %vm2038_vm13, 0.0, %v860_v48 }
  0xb8   :  { %929 = vst [vmem:[#allocation8 + $0x718] sm:$0xff] %v896_v22  ;;  %931 = vst [vmem:[#allocation8 + $0x728] sm:$0xff] %v898_v4  ;;  %v907_v44 = vsel %vm2050_vm14, 0.0, %v861_v50  ;;  %v908_v39 = vsel %vm2062_vm15, 0.0, %v862_v52  ;;  %v863_v46 = vld [vmem:[#allocation5 + $0x780] sm:$0xff]  ;;  %v864_v38 = vld [vmem:[#allocation5 + $0x788] sm:$0xff] }
  0xb9   :  { %932 = vst [vmem:[#allocation8 + $0x730] sm:$0xff] %v899_v20  ;;  %933 = vst [vmem:[#allocation8 + $0x738] sm:$0xff] %v900_v40  ;;  %v865_v51 = vld [vmem:[#allocation5 + $0x790] sm:$0xff]  ;;  %v909_v57 = vsel %vm2022_vm11, 0.0, %v863_v46  ;;  %v910_v58 = vsel %vm2038_vm13, 0.0, %v864_v38  ;;  %v866_v62 = vld [vmem:[#allocation5 + $0x798] sm:$0xff] }
  0xba   :  { %934 = vst [vmem:[#allocation8 + $0x740] sm:$0xff] %v901_v42  ;;  %935 = vst [vmem:[#allocation8 + $0x748] sm:$0xff] %v902_v43  ;;  %v911_v60 = vsel %vm2050_vm14, 0.0, %v865_v51  ;;  %v867_v63 = vld [vmem:[#allocation5 + $0x7a0] sm:$0xff]  ;;  %v868_v54 = vld [vmem:[#allocation5 + $0x7a8] sm:$0xff]  ;;  %v912_v45 = vsel %vm2062_vm15, 0.0, %v866_v62 }
  0xbb   :  { %936 = vst [vmem:[#allocation8 + $0x750] sm:$0xff] %v903_v29  ;;  %937 = vst [vmem:[#allocation8 + $0x758] sm:$0xff] %v904_v41  ;;  %v913_v56 = vsel %vm2022_vm11, 0.0, %v867_v63  ;;  %v914_v49 = vsel %vm2038_vm13, 0.0, %v868_v54  ;;  %v869_v61 = vld [vmem:[#allocation5 + $0x7b0] sm:$0xff]  ;;  %v870_v7 = vld [vmem:[#allocation5 + $0x7b8] sm:$0xff] }
  0xbc   :  { %938 = vst [vmem:[#allocation8 + $0x760] sm:$0xff] %v905_v47  ;;  %939 = vst [vmem:[#allocation8 + $0x768] sm:$0xff] %v906_v53  ;;  %v871_v8 = vld [vmem:[#allocation5 + $0x7c0] sm:$0xff]  ;;  %v915_v10 = vsel %vm2050_vm14, 0.0, %v869_v61  ;;  %v916_v12 = vsel %vm2062_vm15, 0.0, %v870_v7  ;;  %v872_v0 = vld [vmem:[#allocation5 + $0x7c8] sm:$0xff] }
  0xbd   :  { %940 = vst [vmem:[#allocation8 + $0x770] sm:$0xff] %v907_v44  ;;  %941 = vst [vmem:[#allocation8 + $0x778] sm:$0xff] %v908_v39  ;;  %v917_v14 = vsel %vm2022_vm11, 0.0, %v871_v8  ;;  %v873_v55 = vld [vmem:[#allocation5 + $0x7d0] sm:$0xff]  ;;  %v874_v6 = vld [vmem:[#allocation5 + $0x7d8] sm:$0xff]  ;;  %v918_v59 = vsel %vm2038_vm13, 0.0, %v872_v0 }
  0xbe   :  { %942 = vst [vmem:[#allocation8 + $0x780] sm:$0xff] %v909_v57  ;;  %943 = vst [vmem:[#allocation8 + $0x788] sm:$0xff] %v910_v58  ;;  %v919_v11 = vsel %vm2050_vm14, 0.0, %v873_v55  ;;  %v920_v13 = vsel %vm2062_vm15, 0.0, %v874_v6  ;;  %v875_v17 = vld [vmem:[#allocation5 + $0x7e0] sm:$0xff]  ;;  %v876_v24 = vld [vmem:[#allocation5 + $0x7e8] sm:$0xff] }
  0xbf   :  { %944 = vst [vmem:[#allocation8 + $0x790] sm:$0xff] %v911_v60  ;;  %945 = vst [vmem:[#allocation8 + $0x798] sm:$0xff] %v912_v45  ;;  %v877_v27 = vld [vmem:[#allocation5 + $0x7f0] sm:$0xff]  ;;  %v921_v28 = vsel %vm2022_vm11, 0.0, %v875_v17  ;;  %v922_v15 = vsel %vm2038_vm13, 0.0, %v876_v24  ;;  %v878_v18 = vld [vmem:[#allocation5 + $0x7f8] sm:$0xff] }
  0xc0   :  { %946 = vst [vmem:[#allocation8 + $0x7a0] sm:$0xff] %v913_v56  ;;  %947 = vst [vmem:[#allocation8 + $0x7a8] sm:$0xff] %v914_v49  ;;  %v923_v5 = vsel %vm2050_vm14, 0.0, %v877_v27  ;;  %v924_v32 = vsel %vm2062_vm15, 0.0, %v878_v18 }
  0xc1   :  { %948 = vst [vmem:[#allocation8 + $0x7b0] sm:$0xff] %v915_v10  ;;  %949 = vst [vmem:[#allocation8 + $0x7b8] sm:$0xff] %v916_v12 }
  0xc2   :  { %950 = vst [vmem:[#allocation8 + $0x7c0] sm:$0xff] %v917_v14  ;;  %951 = vst [vmem:[#allocation8 + $0x7c8] sm:$0xff] %v918_v59 }
  0xc3   :  { %952 = vst [vmem:[#allocation8 + $0x7d0] sm:$0xff] %v919_v11  ;;  %953 = vst [vmem:[#allocation8 + $0x7d8] sm:$0xff] %v920_v13 }
  0xc4   :  { %954 = vst [vmem:[#allocation8 + $0x7e0] sm:$0xff] %v921_v28  ;;  %955 = vst [vmem:[#allocation8 + $0x7e8] sm:$0xff] %v922_v15 }
  0xc5   :  { %956 = vst [vmem:[#allocation8 + $0x7f0] sm:$0xff] %v923_v5  ;;  %957 = vst [vmem:[#allocation8 + $0x7f8] sm:$0xff] %v924_v32 }
  0xc6   :  { %1052 = shalt.err (!%p1049_p8)
}
  0xc7   :  { %s1053_s25 = scalar_lea.hbm %s2144_s3, 32768 }
  0xc8   :  { %p1054_p9 = scmp.ne.s32.totalorder %s2144_s3, %s1053_s25  ;;  %p1057_p10 = scmp.lt.u32.totalorder %s1053_s25, %s2144_s3 }
  0xca   :  { %p1059_p11 = pnand %p1057_p10, %p1054_p9 }
  0xcc   :  { %1062 = shalt.err (!%p1059_p11)
}
  0xcd   :  { %969 = dma.vmem_to_hbm [thread:$0]  %s964_s21, 32768, %s2144_s3, [#allocation7], %s1072_s30, %s1072_s30, %s1073_s4  }
  0xce   :  { %1067 = dma.done.wait [#allocation7], 32768  }
  0xcf   :  { %1068 = vsyncadd [#allocation7], 4294934528 }
  0xd0   :  { %973 = vsyncpa [#allocation6], 1 }
  0xd1   :  { %974 = vsyncpa [#allocation7], 1 }

</bundles_post_ra>
